<compile_context>
chip_gen: v5e
topology: v5e:2x2
jax: 0.10.0
libtpu: 0.0.40
codegen_flags: <defaults>
</compile_context>

<pallas_src>
import functools

import numpy as np
import jax
import jax.numpy as jnp
from jax import lax
from jax.experimental import pallas as pl
from jax.experimental.pallas import tpu as pltpu

BN_EPS = 1e-5
LANES = 128
SUBLANES = 8

# Rows of the packed per-layer vector table (bias/gamma/beta).
_B1, _G1, _BT1, _B2, _G2, _BT2, _B3 = range(7)


# ----------------------------------------------------------------------------
# In-kernel building blocks
# ----------------------------------------------------------------------------
def _conv_banded(act, w_mat, bias, lc):
    """One 5x5 'valid' conv as a single K = KH*128 MXU contraction."""
    ih, oh, s, kh = lc["ih"], lc["oh"], lc["stride"], lc["kh"]
    x3d = act.reshape(ih, SUBLANES, LANES)
    if s == 2:
        # De-interleave even/odd rows once; every kernel-row tap then becomes a
        # contiguous leading-dim slice of one plane (no per-tap double copies).
        x4 = x3d.reshape(ih // 2, 2, SUBLANES, LANES)
        planes = (x4[:, 0:1].reshape(ih // 2, SUBLANES, LANES),
                  x4[:, 1:2].reshape(ih // 2, SUBLANES, LANES))
    else:
        planes = (x3d,)
    wins = []
    for i in range(kh):                       # unrolled, 5 taps
        if s == 2:
            win = planes[i % 2][i // 2:i // 2 + oh]
        else:
            win = planes[0][i:i + oh]
        wins.append(win)                      # [oh, 8, 128] each
    lhs = jnp.concatenate(wins, axis=-1).reshape(oh * SUBLANES, kh * LANES)
    return jnp.dot(lhs, w_mat, preferred_element_type=jnp.float32) + bias


def _batchnorm(y, gamma, beta, lc, n_batch, r_iota, c_iota):
    """BatchNorm2d (batch statistics) on the packed [OH*8, 128] layout."""
    oh, ow, cout = lc["oh"], lc["ow"], lc["cout"]
    nlanes = ow * cout

    rows = lax.broadcasted_iota(jnp.int32, (oh * SUBLANES, LANES), 0)
    ym = jnp.where((rows % SUBLANES) < n_batch, y, 0.0)   # mask padded batch rows
    s1 = jnp.sum(ym, axis=0, keepdims=True)               # per-lane sum
    s2 = jnp.sum(ym * ym, axis=0, keepdims=True)          # per-lane sum of squares

    # Structural 0/1 matrices generated in-kernel (no DMA):
    #   F  : fold (ow, ch)-packed lanes -> channel
    #   FT : broadcast channel -> (ow, ch)-packed lanes
    F = jnp.where((r_iota < nlanes) & ((r_iota % cout) == c_iota), 1.0, 0.0)
    FT = jnp.where((c_iota < nlanes) & ((c_iota % cout) == r_iota), 1.0, 0.0)

    inv_cnt = 1.0 / lc["count"]                            # 1 / (N * OH * OW)
    stats = jnp.dot(jnp.concatenate([s1, s2], axis=0), F,
                    preferred_element_type=jnp.float32) * inv_cnt
    mean, ex2 = stats[0:1], stats[1:2]
    var = ex2 - mean * mean                                # biased variance (train mode)
    scale_c = gamma * lax.rsqrt(var + BN_EPS)
    shift_c = beta - mean * scale_c
    ss = jnp.dot(jnp.concatenate([scale_c, shift_c], axis=0), FT,
                 preferred_element_type=jnp.float32)
    return y * ss[0:1] + ss[1:2]


def _fused_cnn_kernel(x_ref, wb1_ref, vec_ref, wb2_hbm, wb3_hbm,
                      o_ref, wb2_v, wb3_v, sem, *, cfg, n_batch):
    # Prefetch layer-2 / layer-3 banded weights; overlaps layer-1 compute.
    cp2 = pltpu.make_async_copy(wb2_hbm, wb2_v, sem.at[0])
    cp3 = pltpu.make_async_copy(wb3_hbm, wb3_v, sem.at[1])
    cp2.start()
    cp3.start()

    vecs = vec_ref[...]                                     # [8, 128] bias/gamma/beta table
    r_iota = lax.broadcasted_iota(jnp.int32, (LANES, LANES), 0)
    c_iota = lax.broadcasted_iota(jnp.int32, (LANES, LANES), 1)

    # ---- layer 1: conv(s=2) + BN(batch stats) + ReLU ------------------------
    y = _conv_banded(x_ref[...], wb1_ref[...], vecs[_B1:_B1 + 1], cfg[0])
    y = _batchnorm(y, vecs[_G1:_G1 + 1], vecs[_BT1:_BT1 + 1], cfg[0],
                   n_batch, r_iota, c_iota)
    act = jnp.maximum(y, 0.0)

    # ---- layer 2: conv(s=2) + BN(batch stats) + ReLU ------------------------
    cp2.wait()
    y = _conv_banded(act, wb2_v[...], vecs[_B2:_B2 + 1], cfg[1])
    y = _batchnorm(y, vecs[_G2:_G2 + 1], vecs[_BT2:_BT2 + 1], cfg[1],
                   n_batch, r_iota, c_iota)
    act = jnp.maximum(y, 0.0)

    # ---- layer 3: conv(s=1) + ReLU -------------------------------------------
    cp3.wait()
    y = _conv_banded(act, wb3_v[...], vecs[_B3:_B3 + 1], cfg[2])
    o_ref[...] = jnp.maximum(y, 0.0)                        # lane-dense store


# ----------------------------------------------------------------------------
# One-time host-side packing of weights into stacked banded matrices
# ----------------------------------------------------------------------------
def prepare_cnn_extractor(params, input_shape):
    N, C, H, W = input_shape
    assert N <= SUBLANES, "packed layout requires batch <= 8"
    specs = [("w1", "b1", "g1", "bt1", 2, True),
             ("w2", "b2", "g2", "bt2", 2, True),
             ("w3", "b3", None, None, 1, False)]
    wstacks, cfg = [], []
    vecs = np.zeros((SUBLANES, LANES), np.float32)
    vrow = 0
    ih, iw, cin = H, W, C
    for wk, bk, gk, btk, stride, has_bn in specs:
        w = np.asarray(params[wk], np.float32)              # [Cout, Cin, KH, KW]
        b = np.asarray(params[bk], np.float32)
        cout, cin_w, kh, kw = w.shape
        assert cin_w == cin
        oh = (ih - kh) // stride + 1
        ow = (iw - kw) // stride + 1
        assert iw * cin <= LANES and ow * cout <= LANES, (
            "packed-lane layout needs width*channels <= 128 per layer")
        assert stride == 1 or ih % 2 == 0, "s=2 fast path needs even input height"

        # Stacked banded RHS (one K = KH*128 contraction per layer):
        #   Wst[i*128 + wcol*Cin + ci, o*Cout + co] = w[co, ci, i, wcol - stride*o]
        Wst = np.zeros((kh * LANES, LANES), np.float32)
        for i in range(kh):
            for o_ in range(ow):
                for j in range(kw):
                    wcol = stride * o_ + j
                    Wst[i * LANES + wcol * cin:i * LANES + (wcol + 1) * cin,
                        o_ * cout:o_ * cout + cout] = w[:, :, i, j].T
        wstacks.append(jnp.asarray(Wst))

        vecs[vrow, :ow * cout] = np.tile(b, ow)             # packed bias
        vrow += 1
        if has_bn:
            vecs[vrow, :cout] = np.asarray(params[gk], np.float32)
            vecs[vrow + 1, :cout] = np.asarray(params[btk], np.float32)
            vrow += 2

        cfg.append(dict(ih=ih, oh=oh, ow=ow, cout=cout, stride=stride, kh=kh,
                        has_bn=has_bn, count=float(N * oh * ow)))
        ih, iw, cin = oh, ow, cout
    packed = (wstacks[0], jnp.asarray(vecs), wstacks[1], wstacks[2])
    return packed, tuple(cfg)


def cnn_extractor_forward(x, packed, cfg):
    N, C, H, W = x.shape
    # NCHW -> [H, batch, W*C], pad batch to 8 sublanes and lanes to 128.
    # TODO(synk): a producer that emits this packed layout natively would
    # remove the transpose/pad dispatches entirely.
    xp = jnp.transpose(x, (2, 0, 3, 1)).reshape(H, N, W * C)
    xp = jnp.pad(xp, ((0, 0), (0, SUBLANES - N), (0, LANES - W * C)))

    last = cfg[-1]
    oh3, ow3, c3 = last["oh"], last["ow"], last["cout"]

    flops = 0
    for lc in cfg:
        flops += 2 * (lc["oh"] * SUBLANES) * (lc["kh"] * LANES) * LANES
        if lc["has_bn"]:
            flops += 2 * 2 * (2 * LANES * LANES)
    bytes_acc = (xp.size + sum(int(t.size) for t in packed)
                 + oh3 * SUBLANES * LANES) * 4

    vmem = pl.BlockSpec(memory_space=pltpu.MemorySpace.VMEM)
    hbm = pl.BlockSpec(memory_space=pl.ANY)
    kh2, kh3 = cfg[1]["kh"], cfg[2]["kh"]

    out = pl.pallas_call(
        functools.partial(_fused_cnn_kernel, cfg=cfg, n_batch=N),
        out_shape=jax.ShapeDtypeStruct((oh3 * SUBLANES, LANES), jnp.float32),
        in_specs=[vmem,            # packed input
                  vmem,            # layer-1 stacked banded weights
                  vmem,            # bias/gamma/beta table
                  hbm,             # layer-2 weights (async-prefetched in kernel)
                  hbm],            # layer-3 weights (async-prefetched in kernel)
        out_specs=vmem,
        scratch_shapes=[pltpu.VMEM((kh2 * LANES, LANES), jnp.float32),
                        pltpu.VMEM((kh3 * LANES, LANES), jnp.float32),
                        pltpu.SemaphoreType.DMA((2,))],
        compiler_params=pltpu.CompilerParams(vmem_limit_bytes=16 * 1024 * 1024),
        cost_estimate=pl.CostEstimate(flops=int(flops), transcendentals=2 * LANES,
                                      bytes_accessed=int(bytes_acc)),
    )(xp, *packed)

    # Unpack [OH3*8, 128] -> [N, Cout, OH3, OW3]
    o = out.reshape(oh3, SUBLANES, LANES)[:, :N, :ow3 * c3].reshape(oh3, N, ow3, c3)
    return jnp.transpose(o, (1, 3, 0, 2))


# ----------------------------------------------------------------------------
# Pure-JAX reference (correctness check)
# ----------------------------------------------------------------------------
def _conv_ref(x, w, b, stride):
    y = lax.conv_general_dilated(x, w, (stride, stride), "VALID",
                                 dimension_numbers=("NCHW", "OIHW", "NCHW"))
    return y + b.reshape(1, -1, 1, 1)


def _bn_ref(x, gamma, beta):
    mean = jnp.mean(x, axis=(0, 2, 3), keepdims=True)
    var = jnp.mean((x - mean) ** 2, axis=(0, 2, 3), keepdims=True)
    xn = (x - mean) * lax.rsqrt(var + BN_EPS)
    return xn * gamma.reshape(1, -1, 1, 1) + beta.reshape(1, -1, 1, 1)


def cnn_extractor_ref(x, p):
    h = jnp.maximum(_bn_ref(_conv_ref(x, p["w1"], p["b1"], 2), p["g1"], p["bt1"]), 0.0)
    h = jnp.maximum(_bn_ref(_conv_ref(h, p["w2"], p["b2"], 2), p["g2"], p["bt2"]), 0.0)
    h = jnp.maximum(_conv_ref(h, p["w3"], p["b3"], 1), 0.0)
    return h


def init_params(key, input_dim, hidden_dim, num_objects):
    ks = jax.random.split(key, 6)
    return {
        "w1": 0.1 * jax.random.normal(ks[0], (hidden_dim, input_dim, 5, 5), jnp.float32),
        "b1": 0.1 * jax.random.normal(ks[1], (hidden_dim,), jnp.float32),
        "g1": jnp.ones((hidden_dim,), jnp.float32),
        "bt1": jnp.zeros((hidden_dim,), jnp.float32),
        "w2": 0.1 * jax.random.normal(ks[2], (hidden_dim, hidden_dim, 5, 5), jnp.float32),
        "b2": 0.1 * jax.random.normal(ks[3], (hidden_dim,), jnp.float32),
        "g2": jnp.ones((hidden_dim,), jnp.float32),
        "bt2": jnp.zeros((hidden_dim,), jnp.float32),
        "w3": 0.1 * jax.random.normal(ks[4], (num_objects, hidden_dim, 5, 5), jnp.float32),
        "b3": 0.1 * jax.random.normal(ks[5], (num_objects,), jnp.float32),
    }


if __name__ == "__main__":
    # Spatial must survive two stride-2 5x5 convs + one 5x5 conv: 32 -> 14 -> 5 -> 1
    N, input_dim, H, W = 2, 4, 32, 32
    hidden_dim, num_objects = 8, 5

    key = jax.random.PRNGKey(0)
    kx, kp = jax.random.split(key)
    x = jax.random.normal(kx, (N, input_dim, H, W), jnp.float32)
    params = init_params(kp, input_dim, hidden_dim, num_objects)

    packed, cfg = prepare_cnn_extractor(params, (N, input_dim, H, W))
    fwd = jax.jit(functools.partial(cnn_extractor_forward, cfg=cfg))
    out = fwd(x, packed)
    jax.block_until_ready(out)

    ref = cnn_extractor_ref(x, params)
    assert out.shape == (N, num_objects, 1, 1), out.shape
    max_err = float(jnp.max(jnp.abs(out - ref)))
    assert jnp.allclose(out, ref, atol=5e-4, rtol=5e-4), max_err

    print("KERNEL_OK")
</pallas_src>

<mosaic_0001>
module attributes {stable_mosaic.version = 11 : i64} {
  func.func @_fused_cnn_kernel(%arg0: memref<32x8x128xf32, #tpu.memory_space<vmem>>, %arg1: memref<640x128xf32, #tpu.memory_space<vmem>>, %arg2: memref<8x128xf32, #tpu.memory_space<vmem>>, %arg3: memref<640x128xf32, #tpu.memory_space<any>>, %arg4: memref<640x128xf32, #tpu.memory_space<any>>, %arg5: memref<8x128xf32, #tpu.memory_space<vmem>>, %arg6: memref<640x128xf32, #tpu.memory_space<vmem>>, %arg7: memref<640x128xf32, #tpu.memory_space<vmem>>, %arg8: memref<2x!tpu.dma_semaphore, #tpu.memory_space<semaphore_mem>>) attributes {dimension_semantics = [], scalar_prefetch = 0 : i64, scratch_operands = 3 : i64, tpu.core_type = #tpu.core_type<tc>} {
    %c0_i32 = arith.constant 0 : i32
    %0 = tpu.memref_slice %arg8[%c0_i32] : memref<2x!tpu.dma_semaphore, #tpu.memory_space<semaphore_mem>> -> memref<1x!tpu.dma_semaphore, #tpu.memory_space<semaphore_mem>>
    %1 = tpu.memref_squeeze %0 : memref<1x!tpu.dma_semaphore, #tpu.memory_space<semaphore_mem>> -> memref<!tpu.dma_semaphore, #tpu.memory_space<semaphore_mem>>
    tpu.enqueue_dma source(%arg3 : memref<640x128xf32, #tpu.memory_space<any>>) target(%arg6 : memref<640x128xf32, #tpu.memory_space<vmem>>) target_semaphore(%1 : memref<!tpu.dma_semaphore, #tpu.memory_space<semaphore_mem>>)
    %c1_i32 = arith.constant 1 : i32
    %2 = tpu.memref_slice %arg8[%c1_i32] : memref<2x!tpu.dma_semaphore, #tpu.memory_space<semaphore_mem>> -> memref<1x!tpu.dma_semaphore, #tpu.memory_space<semaphore_mem>>
    %3 = tpu.memref_squeeze %2 : memref<1x!tpu.dma_semaphore, #tpu.memory_space<semaphore_mem>> -> memref<!tpu.dma_semaphore, #tpu.memory_space<semaphore_mem>>
    tpu.enqueue_dma source(%arg4 : memref<640x128xf32, #tpu.memory_space<any>>) target(%arg7 : memref<640x128xf32, #tpu.memory_space<vmem>>) target_semaphore(%3 : memref<!tpu.dma_semaphore, #tpu.memory_space<semaphore_mem>>)
    %c0 = arith.constant 0 : index
    %c0_0 = arith.constant 0 : index
    %4 = vector.load %arg2[%c0, %c0_0] : memref<8x128xf32, #tpu.memory_space<vmem>>, vector<8x128xf32>
    %5 = tpu.iota {dimensions = array<i32: 0>} : vector<128x128xi32>
    %6 = tpu.iota {dimensions = array<i32: 1>} : vector<128x128xi32>
    %c0_1 = arith.constant 0 : index
    %c0_2 = arith.constant 0 : index
    %c0_3 = arith.constant 0 : index
    %7 = vector.load %arg0[%c0_1, %c0_2, %c0_3] : memref<32x8x128xf32, #tpu.memory_space<vmem>>, vector<32x8x128xf32>
    %c0_4 = arith.constant 0 : index
    %c0_5 = arith.constant 0 : index
    %8 = vector.load %arg1[%c0_4, %c0_5] : memref<640x128xf32, #tpu.memory_space<vmem>>, vector<640x128xf32>
    %9 = vector.extract_strided_slice %4 {offsets = [0, 0], sizes = [1, 128], strides = [1, 1]} : vector<8x128xf32> to vector<1x128xf32>
    %10 = vector.shape_cast %7 : vector<32x8x128xf32> to vector<16x2x8x128xf32>
    %11 = vector.extract_strided_slice %10 {offsets = [0, 0, 0, 0], sizes = [16, 1, 8, 128], strides = [1, 1, 1, 1]} : vector<16x2x8x128xf32> to vector<16x1x8x128xf32>
    %12 = vector.shape_cast %11 : vector<16x1x8x128xf32> to vector<16x8x128xf32>
    %13 = vector.extract_strided_slice %10 {offsets = [0, 1, 0, 0], sizes = [16, 1, 8, 128], strides = [1, 1, 1, 1]} : vector<16x2x8x128xf32> to vector<16x1x8x128xf32>
    %14 = vector.shape_cast %13 : vector<16x1x8x128xf32> to vector<16x8x128xf32>
    %15 = vector.extract_strided_slice %12 {offsets = [0, 0, 0], sizes = [14, 8, 128], strides = [1, 1, 1]} : vector<16x8x128xf32> to vector<14x8x128xf32>
    %16 = vector.extract_strided_slice %14 {offsets = [0, 0, 0], sizes = [14, 8, 128], strides = [1, 1, 1]} : vector<16x8x128xf32> to vector<14x8x128xf32>
    %17 = vector.extract_strided_slice %12 {offsets = [1, 0, 0], sizes = [14, 8, 128], strides = [1, 1, 1]} : vector<16x8x128xf32> to vector<14x8x128xf32>
    %18 = vector.extract_strided_slice %14 {offsets = [1, 0, 0], sizes = [14, 8, 128], strides = [1, 1, 1]} : vector<16x8x128xf32> to vector<14x8x128xf32>
    %19 = vector.extract_strided_slice %12 {offsets = [2, 0, 0], sizes = [14, 8, 128], strides = [1, 1, 1]} : vector<16x8x128xf32> to vector<14x8x128xf32>
    %20 = tpu.concatenate %15, %16, %17, %18, %19 in 2 : vector<14x8x128xf32>, vector<14x8x128xf32>, vector<14x8x128xf32>, vector<14x8x128xf32>, vector<14x8x128xf32> -> vector<14x8x640xf32>
    %21 = vector.shape_cast %20 : vector<14x8x640xf32> to vector<112x640xf32>
    %cst = arith.constant dense<0.000000e+00> : vector<112x128xf32>
    %22 = tpu.matmul %21, %8, %cst {dimension_numbers = #tpu.dot_dimension_numbers<[1], [0], [0], [1], [0, 0, 1, 1], [], []>} : vector<112x640xf32>, vector<640x128xf32>, vector<112x128xf32> -> vector<112x128xf32>
    %23 = vector.broadcast %9 : vector<1x128xf32> to vector<112x128xf32>
    %24 = arith.addf %22, %23 : vector<112x128xf32>
    %25 = vector.extract_strided_slice %4 {offsets = [1, 0], sizes = [1, 128], strides = [1, 1]} : vector<8x128xf32> to vector<1x128xf32>
    %26 = vector.extract_strided_slice %4 {offsets = [2, 0], sizes = [1, 128], strides = [1, 1]} : vector<8x128xf32> to vector<1x128xf32>
    %27 = tpu.iota {dimensions = array<i32: 0>} : vector<112x128xi32>
    %c8_i32 = arith.constant 8 : i32
    %c0_i32_6 = arith.constant 0 : i32
    %28 = arith.cmpi eq, %c8_i32, %c0_i32_6 : i32
    %c1_i32_7 = arith.constant 1 : i32
    %29 = arith.select %28, %c1_i32_7, %c8_i32 : i32
    %30 = vector.broadcast %29 : i32 to vector<112x128xi32>
    %31 = arith.remsi %27, %30 : vector<112x128xi32>
    %c0_i32_8 = arith.constant 0 : i32
    %32 = vector.broadcast %c0_i32_8 : i32 to vector<112x128xi32>
    %33 = arith.cmpi ne, %31, %32 : vector<112x128xi32>
    %c0_i32_9 = arith.constant 0 : i32
    %34 = vector.broadcast %c0_i32_9 : i32 to vector<112x128xi32>
    %35 = arith.cmpi slt, %31, %34 : vector<112x128xi32>
    %c0_i32_10 = arith.constant 0 : i32
    %36 = arith.cmpi slt, %29, %c0_i32_10 : i32
    %37 = vector.broadcast %36 : i1 to vector<112x128xi1>
    %38 = vector.broadcast %37 : vector<112x128xi1> to vector<112x128xi1>
    %39 = arith.xori %35, %38 : vector<112x128xi1>
    %40 = arith.andi %39, %33 : vector<112x128xi1>
    %41 = vector.broadcast %29 : i32 to vector<112x128xi32>
    %42 = arith.addi %31, %41 : vector<112x128xi32>
    %43 = arith.select %40, %42, %31 : vector<112x128xi1>, vector<112x128xi32>
    %c2_i32 = arith.constant 2 : i32
    %44 = vector.broadcast %c2_i32 : i32 to vector<112x128xi32>
    %45 = arith.cmpi slt, %43, %44 : vector<112x128xi32>
    %cst_11 = arith.constant 0.000000e+00 : f32
    %46 = vector.broadcast %cst_11 : f32 to vector<112x128xf32>
    %47 = arith.select %45, %24, %46 : vector<112x128xi1>, vector<112x128xf32>
    %cst_12 = arith.constant dense<0.000000e+00> : vector<128xf32>
    %48 = vector.multi_reduction <add>, %47, %cst_12 [0] : vector<112x128xf32> to vector<128xf32>
    %49 = vector.shape_cast %48 : vector<128xf32> to vector<1x128xf32>
    %50 = arith.mulf %47, %47 : vector<112x128xf32>
    %cst_13 = arith.constant dense<0.000000e+00> : vector<128xf32>
    %51 = vector.multi_reduction <add>, %50, %cst_13 [0] : vector<112x128xf32> to vector<128xf32>
    %52 = vector.shape_cast %51 : vector<128xf32> to vector<1x128xf32>
    %c112_i32 = arith.constant 112 : i32
    %53 = vector.broadcast %c112_i32 : i32 to vector<128x128xi32>
    %54 = arith.cmpi slt, %5, %53 : vector<128x128xi32>
    %c8_i32_14 = arith.constant 8 : i32
    %c0_i32_15 = arith.constant 0 : i32
    %55 = arith.cmpi eq, %c8_i32_14, %c0_i32_15 : i32
    %c1_i32_16 = arith.constant 1 : i32
    %56 = arith.select %55, %c1_i32_16, %c8_i32_14 : i32
    %57 = vector.broadcast %56 : i32 to vector<128x128xi32>
    %58 = arith.remsi %5, %57 : vector<128x128xi32>
    %c0_i32_17 = arith.constant 0 : i32
    %59 = vector.broadcast %c0_i32_17 : i32 to vector<128x128xi32>
    %60 = arith.cmpi ne, %58, %59 : vector<128x128xi32>
    %c0_i32_18 = arith.constant 0 : i32
    %61 = vector.broadcast %c0_i32_18 : i32 to vector<128x128xi32>
    %62 = arith.cmpi slt, %58, %61 : vector<128x128xi32>
    %c0_i32_19 = arith.constant 0 : i32
    %63 = arith.cmpi slt, %56, %c0_i32_19 : i32
    %64 = vector.broadcast %63 : i1 to vector<128x128xi1>
    %65 = vector.broadcast %64 : vector<128x128xi1> to vector<128x128xi1>
    %66 = arith.xori %62, %65 : vector<128x128xi1>
    %67 = arith.andi %66, %60 : vector<128x128xi1>
    %68 = vector.broadcast %56 : i32 to vector<128x128xi32>
    %69 = arith.addi %58, %68 : vector<128x128xi32>
    %70 = arith.select %67, %69, %58 : vector<128x128xi1>, vector<128x128xi32>
    %71 = arith.cmpi eq, %70, %6 : vector<128x128xi32>
    %72 = arith.andi %54, %71 : vector<128x128xi1>
    %cst_20 = arith.constant 1.000000e+00 : f32
    %cst_21 = arith.constant 0.000000e+00 : f32
    %73 = vector.broadcast %cst_20 : f32 to vector<128x128xf32>
    %74 = vector.broadcast %cst_21 : f32 to vector<128x128xf32>
    %75 = arith.select %72, %73, %74 : vector<128x128xi1>, vector<128x128xf32>
    %c112_i32_22 = arith.constant 112 : i32
    %76 = vector.broadcast %c112_i32_22 : i32 to vector<128x128xi32>
    %77 = arith.cmpi slt, %6, %76 : vector<128x128xi32>
    %c8_i32_23 = arith.constant 8 : i32
    %c0_i32_24 = arith.constant 0 : i32
    %78 = arith.cmpi eq, %c8_i32_23, %c0_i32_24 : i32
    %c1_i32_25 = arith.constant 1 : i32
    %79 = arith.select %78, %c1_i32_25, %c8_i32_23 : i32
    %80 = vector.broadcast %79 : i32 to vector<128x128xi32>
    %81 = arith.remsi %6, %80 : vector<128x128xi32>
    %c0_i32_26 = arith.constant 0 : i32
    %82 = vector.broadcast %c0_i32_26 : i32 to vector<128x128xi32>
    %83 = arith.cmpi ne, %81, %82 : vector<128x128xi32>
    %c0_i32_27 = arith.constant 0 : i32
    %84 = vector.broadcast %c0_i32_27 : i32 to vector<128x128xi32>
    %85 = arith.cmpi slt, %81, %84 : vector<128x128xi32>
    %c0_i32_28 = arith.constant 0 : i32
    %86 = arith.cmpi slt, %79, %c0_i32_28 : i32
    %87 = vector.broadcast %86 : i1 to vector<128x128xi1>
    %88 = vector.broadcast %87 : vector<128x128xi1> to vector<128x128xi1>
    %89 = arith.xori %85, %88 : vector<128x128xi1>
    %90 = arith.andi %89, %83 : vector<128x128xi1>
    %91 = vector.broadcast %79 : i32 to vector<128x128xi32>
    %92 = arith.addi %81, %91 : vector<128x128xi32>
    %93 = arith.select %90, %92, %81 : vector<128x128xi1>, vector<128x128xi32>
    %94 = arith.cmpi eq, %93, %5 : vector<128x128xi32>
    %95 = arith.andi %77, %94 : vector<128x128xi1>
    %cst_29 = arith.constant 1.000000e+00 : f32
    %cst_30 = arith.constant 0.000000e+00 : f32
    %96 = vector.broadcast %cst_29 : f32 to vector<128x128xf32>
    %97 = vector.broadcast %cst_30 : f32 to vector<128x128xf32>
    %98 = arith.select %95, %96, %97 : vector<128x128xi1>, vector<128x128xf32>
    %99 = tpu.concatenate %49, %52 in 0 : vector<1x128xf32>, vector<1x128xf32> -> vector<2x128xf32>
    %cst_31 = arith.constant dense<0.000000e+00> : vector<2x128xf32>
    %100 = tpu.matmul %99, %75, %cst_31 {dimension_numbers = #tpu.dot_dimension_numbers<[1], [0], [0], [1], [0, 0, 1, 1], [], []>} : vector<2x128xf32>, vector<128x128xf32>, vector<2x128xf32> -> vector<2x128xf32>
    %cst_32 = arith.constant 0.00255102036 : f32
    %101 = vector.broadcast %cst_32 : f32 to vector<2x128xf32>
    %102 = arith.mulf %100, %101 : vector<2x128xf32>
    %103 = vector.extract_strided_slice %102 {offsets = [0, 0], sizes = [1, 128], strides = [1, 1]} : vector<2x128xf32> to vector<1x128xf32>
    %104 = vector.extract_strided_slice %102 {offsets = [1, 0], sizes = [1, 128], strides = [1, 1]} : vector<2x128xf32> to vector<1x128xf32>
    %105 = arith.mulf %103, %103 : vector<1x128xf32>
    %106 = arith.subf %104, %105 : vector<1x128xf32>
    %cst_33 = arith.constant 9.99999974E-6 : f32
    %107 = vector.broadcast %cst_33 : f32 to vector<1x128xf32>
    %108 = arith.addf %106, %107 : vector<1x128xf32>
    %109 = math.rsqrt %108 : vector<1x128xf32>
    %110 = arith.mulf %25, %109 : vector<1x128xf32>
    %111 = arith.mulf %103, %110 : vector<1x128xf32>
    %112 = arith.subf %26, %111 : vector<1x128xf32>
    %113 = tpu.concatenate %110, %112 in 0 : vector<1x128xf32>, vector<1x128xf32> -> vector<2x128xf32>
    %cst_34 = arith.constant dense<0.000000e+00> : vector<2x128xf32>
    %114 = tpu.matmul %113, %98, %cst_34 {dimension_numbers = #tpu.dot_dimension_numbers<[1], [0], [0], [1], [0, 0, 1, 1], [], []>} : vector<2x128xf32>, vector<128x128xf32>, vector<2x128xf32> -> vector<2x128xf32>
    %115 = vector.extract_strided_slice %114 {offsets = [0, 0], sizes = [1, 128], strides = [1, 1]} : vector<2x128xf32> to vector<1x128xf32>
    %116 = vector.broadcast %115 : vector<1x128xf32> to vector<112x128xf32>
    %117 = arith.mulf %24, %116 : vector<112x128xf32>
    %118 = vector.extract_strided_slice %114 {offsets = [1, 0], sizes = [1, 128], strides = [1, 1]} : vector<2x128xf32> to vector<1x128xf32>
    %119 = vector.broadcast %118 : vector<1x128xf32> to vector<112x128xf32>
    %120 = arith.addf %117, %119 : vector<112x128xf32>
    %cst_35 = arith.constant 0.000000e+00 : f32
    %121 = vector.broadcast %cst_35 : f32 to vector<112x128xf32>
    %122 = arith.maximumf %120, %121 : vector<112x128xf32>
    %c0_i32_36 = arith.constant 0 : i32
    %123 = tpu.memref_slice %arg8[%c0_i32_36] : memref<2x!tpu.dma_semaphore, #tpu.memory_space<semaphore_mem>> -> memref<1x!tpu.dma_semaphore, #tpu.memory_space<semaphore_mem>>
    %124 = tpu.memref_squeeze %123 : memref<1x!tpu.dma_semaphore, #tpu.memory_space<semaphore_mem>> -> memref<!tpu.dma_semaphore, #tpu.memory_space<semaphore_mem>>
    tpu.wait_dma2 semaphore(%124 : memref<!tpu.dma_semaphore, #tpu.memory_space<semaphore_mem>>) src(%arg3 : memref<640x128xf32, #tpu.memory_space<any>>) dst(%arg6 : memref<640x128xf32, #tpu.memory_space<vmem>>)
    %c0_37 = arith.constant 0 : index
    %c0_38 = arith.constant 0 : index
    %125 = vector.load %arg6[%c0_37, %c0_38] : memref<640x128xf32, #tpu.memory_space<vmem>>, vector<640x128xf32>
    %126 = vector.extract_strided_slice %4 {offsets = [3, 0], sizes = [1, 128], strides = [1, 1]} : vector<8x128xf32> to vector<1x128xf32>
    %127 = vector.shape_cast %122 : vector<112x128xf32> to vector<14x8x128xf32>
    %128 = vector.shape_cast %127 : vector<14x8x128xf32> to vector<7x2x8x128xf32>
    %129 = vector.extract_strided_slice %128 {offsets = [0, 0, 0, 0], sizes = [7, 1, 8, 128], strides = [1, 1, 1, 1]} : vector<7x2x8x128xf32> to vector<7x1x8x128xf32>
    %130 = vector.shape_cast %129 : vector<7x1x8x128xf32> to vector<7x8x128xf32>
    %131 = vector.extract_strided_slice %128 {offsets = [0, 1, 0, 0], sizes = [7, 1, 8, 128], strides = [1, 1, 1, 1]} : vector<7x2x8x128xf32> to vector<7x1x8x128xf32>
    %132 = vector.shape_cast %131 : vector<7x1x8x128xf32> to vector<7x8x128xf32>
    %133 = vector.extract_strided_slice %130 {offsets = [0, 0, 0], sizes = [5, 8, 128], strides = [1, 1, 1]} : vector<7x8x128xf32> to vector<5x8x128xf32>
    %134 = vector.extract_strided_slice %132 {offsets = [0, 0, 0], sizes = [5, 8, 128], strides = [1, 1, 1]} : vector<7x8x128xf32> to vector<5x8x128xf32>
    %135 = vector.extract_strided_slice %130 {offsets = [1, 0, 0], sizes = [5, 8, 128], strides = [1, 1, 1]} : vector<7x8x128xf32> to vector<5x8x128xf32>
    %136 = vector.extract_strided_slice %132 {offsets = [1, 0, 0], sizes = [5, 8, 128], strides = [1, 1, 1]} : vector<7x8x128xf32> to vector<5x8x128xf32>
    %137 = vector.extract_strided_slice %130 {offsets = [2, 0, 0], sizes = [5, 8, 128], strides = [1, 1, 1]} : vector<7x8x128xf32> to vector<5x8x128xf32>
    %138 = tpu.concatenate %133, %134, %135, %136, %137 in 2 : vector<5x8x128xf32>, vector<5x8x128xf32>, vector<5x8x128xf32>, vector<5x8x128xf32>, vector<5x8x128xf32> -> vector<5x8x640xf32>
    %139 = vector.shape_cast %138 : vector<5x8x640xf32> to vector<40x640xf32>
    %cst_39 = arith.constant dense<0.000000e+00> : vector<40x128xf32>
    %140 = tpu.matmul %139, %125, %cst_39 {dimension_numbers = #tpu.dot_dimension_numbers<[1], [0], [0], [1], [0, 0, 1, 1], [], []>} : vector<40x640xf32>, vector<640x128xf32>, vector<40x128xf32> -> vector<40x128xf32>
    %141 = vector.broadcast %126 : vector<1x128xf32> to vector<40x128xf32>
    %142 = arith.addf %140, %141 : vector<40x128xf32>
    %143 = vector.extract_strided_slice %4 {offsets = [4, 0], sizes = [1, 128], strides = [1, 1]} : vector<8x128xf32> to vector<1x128xf32>
    %144 = vector.extract_strided_slice %4 {offsets = [5, 0], sizes = [1, 128], strides = [1, 1]} : vector<8x128xf32> to vector<1x128xf32>
    %145 = tpu.iota {dimensions = array<i32: 0>} : vector<40x128xi32>
    %c8_i32_40 = arith.constant 8 : i32
    %c0_i32_41 = arith.constant 0 : i32
    %146 = arith.cmpi eq, %c8_i32_40, %c0_i32_41 : i32
    %c1_i32_42 = arith.constant 1 : i32
    %147 = arith.select %146, %c1_i32_42, %c8_i32_40 : i32
    %148 = vector.broadcast %147 : i32 to vector<40x128xi32>
    %149 = arith.remsi %145, %148 : vector<40x128xi32>
    %c0_i32_43 = arith.constant 0 : i32
    %150 = vector.broadcast %c0_i32_43 : i32 to vector<40x128xi32>
    %151 = arith.cmpi ne, %149, %150 : vector<40x128xi32>
    %c0_i32_44 = arith.constant 0 : i32
    %152 = vector.broadcast %c0_i32_44 : i32 to vector<40x128xi32>
    %153 = arith.cmpi slt, %149, %152 : vector<40x128xi32>
    %c0_i32_45 = arith.constant 0 : i32
    %154 = arith.cmpi slt, %147, %c0_i32_45 : i32
    %155 = vector.broadcast %154 : i1 to vector<40x128xi1>
    %156 = vector.broadcast %155 : vector<40x128xi1> to vector<40x128xi1>
    %157 = arith.xori %153, %156 : vector<40x128xi1>
    %158 = arith.andi %157, %151 : vector<40x128xi1>
    %159 = vector.broadcast %147 : i32 to vector<40x128xi32>
    %160 = arith.addi %149, %159 : vector<40x128xi32>
    %161 = arith.select %158, %160, %149 : vector<40x128xi1>, vector<40x128xi32>
    %c2_i32_46 = arith.constant 2 : i32
    %162 = vector.broadcast %c2_i32_46 : i32 to vector<40x128xi32>
    %163 = arith.cmpi slt, %161, %162 : vector<40x128xi32>
    %cst_47 = arith.constant 0.000000e+00 : f32
    %164 = vector.broadcast %cst_47 : f32 to vector<40x128xf32>
    %165 = arith.select %163, %142, %164 : vector<40x128xi1>, vector<40x128xf32>
    %cst_48 = arith.constant dense<0.000000e+00> : vector<128xf32>
    %166 = vector.multi_reduction <add>, %165, %cst_48 [0] : vector<40x128xf32> to vector<128xf32>
    %167 = vector.shape_cast %166 : vector<128xf32> to vector<1x128xf32>
    %168 = arith.mulf %165, %165 : vector<40x128xf32>
    %cst_49 = arith.constant dense<0.000000e+00> : vector<128xf32>
    %169 = vector.multi_reduction <add>, %168, %cst_49 [0] : vector<40x128xf32> to vector<128xf32>
    %170 = vector.shape_cast %169 : vector<128xf32> to vector<1x128xf32>
    %c40_i32 = arith.constant 40 : i32
    %171 = vector.broadcast %c40_i32 : i32 to vector<128x128xi32>
    %172 = arith.cmpi slt, %5, %171 : vector<128x128xi32>
    %c8_i32_50 = arith.constant 8 : i32
    %c0_i32_51 = arith.constant 0 : i32
    %173 = arith.cmpi eq, %c8_i32_50, %c0_i32_51 : i32
    %c1_i32_52 = arith.constant 1 : i32
    %174 = arith.select %173, %c1_i32_52, %c8_i32_50 : i32
    %175 = vector.broadcast %174 : i32 to vector<128x128xi32>
    %176 = arith.remsi %5, %175 : vector<128x128xi32>
    %c0_i32_53 = arith.constant 0 : i32
    %177 = vector.broadcast %c0_i32_53 : i32 to vector<128x128xi32>
    %178 = arith.cmpi ne, %176, %177 : vector<128x128xi32>
    %c0_i32_54 = arith.constant 0 : i32
    %179 = vector.broadcast %c0_i32_54 : i32 to vector<128x128xi32>
    %180 = arith.cmpi slt, %176, %179 : vector<128x128xi32>
    %c0_i32_55 = arith.constant 0 : i32
    %181 = arith.cmpi slt, %174, %c0_i32_55 : i32
    %182 = vector.broadcast %181 : i1 to vector<128x128xi1>
    %183 = vector.broadcast %182 : vector<128x128xi1> to vector<128x128xi1>
    %184 = arith.xori %180, %183 : vector<128x128xi1>
    %185 = arith.andi %184, %178 : vector<128x128xi1>
    %186 = vector.broadcast %174 : i32 to vector<128x128xi32>
    %187 = arith.addi %176, %186 : vector<128x128xi32>
    %188 = arith.select %185, %187, %176 : vector<128x128xi1>, vector<128x128xi32>
    %189 = arith.cmpi eq, %188, %6 : vector<128x128xi32>
    %190 = arith.andi %172, %189 : vector<128x128xi1>
    %cst_56 = arith.constant 1.000000e+00 : f32
    %cst_57 = arith.constant 0.000000e+00 : f32
    %191 = vector.broadcast %cst_56 : f32 to vector<128x128xf32>
    %192 = vector.broadcast %cst_57 : f32 to vector<128x128xf32>
    %193 = arith.select %190, %191, %192 : vector<128x128xi1>, vector<128x128xf32>
    %c40_i32_58 = arith.constant 40 : i32
    %194 = vector.broadcast %c40_i32_58 : i32 to vector<128x128xi32>
    %195 = arith.cmpi slt, %6, %194 : vector<128x128xi32>
    %c8_i32_59 = arith.constant 8 : i32
    %c0_i32_60 = arith.constant 0 : i32
    %196 = arith.cmpi eq, %c8_i32_59, %c0_i32_60 : i32
    %c1_i32_61 = arith.constant 1 : i32
    %197 = arith.select %196, %c1_i32_61, %c8_i32_59 : i32
    %198 = vector.broadcast %197 : i32 to vector<128x128xi32>
    %199 = arith.remsi %6, %198 : vector<128x128xi32>
    %c0_i32_62 = arith.constant 0 : i32
    %200 = vector.broadcast %c0_i32_62 : i32 to vector<128x128xi32>
    %201 = arith.cmpi ne, %199, %200 : vector<128x128xi32>
    %c0_i32_63 = arith.constant 0 : i32
    %202 = vector.broadcast %c0_i32_63 : i32 to vector<128x128xi32>
    %203 = arith.cmpi slt, %199, %202 : vector<128x128xi32>
    %c0_i32_64 = arith.constant 0 : i32
    %204 = arith.cmpi slt, %197, %c0_i32_64 : i32
    %205 = vector.broadcast %204 : i1 to vector<128x128xi1>
    %206 = vector.broadcast %205 : vector<128x128xi1> to vector<128x128xi1>
    %207 = arith.xori %203, %206 : vector<128x128xi1>
    %208 = arith.andi %207, %201 : vector<128x128xi1>
    %209 = vector.broadcast %197 : i32 to vector<128x128xi32>
    %210 = arith.addi %199, %209 : vector<128x128xi32>
    %211 = arith.select %208, %210, %199 : vector<128x128xi1>, vector<128x128xi32>
    %212 = arith.cmpi eq, %211, %5 : vector<128x128xi32>
    %213 = arith.andi %195, %212 : vector<128x128xi1>
    %cst_65 = arith.constant 1.000000e+00 : f32
    %cst_66 = arith.constant 0.000000e+00 : f32
    %214 = vector.broadcast %cst_65 : f32 to vector<128x128xf32>
    %215 = vector.broadcast %cst_66 : f32 to vector<128x128xf32>
    %216 = arith.select %213, %214, %215 : vector<128x128xi1>, vector<128x128xf32>
    %217 = tpu.concatenate %167, %170 in 0 : vector<1x128xf32>, vector<1x128xf32> -> vector<2x128xf32>
    %cst_67 = arith.constant dense<0.000000e+00> : vector<2x128xf32>
    %218 = tpu.matmul %217, %193, %cst_67 {dimension_numbers = #tpu.dot_dimension_numbers<[1], [0], [0], [1], [0, 0, 1, 1], [], []>} : vector<2x128xf32>, vector<128x128xf32>, vector<2x128xf32> -> vector<2x128xf32>
    %cst_68 = arith.constant 2.000000e-02 : f32
    %219 = vector.broadcast %cst_68 : f32 to vector<2x128xf32>
    %220 = arith.mulf %218, %219 : vector<2x128xf32>
    %221 = vector.extract_strided_slice %220 {offsets = [0, 0], sizes = [1, 128], strides = [1, 1]} : vector<2x128xf32> to vector<1x128xf32>
    %222 = vector.extract_strided_slice %220 {offsets = [1, 0], sizes = [1, 128], strides = [1, 1]} : vector<2x128xf32> to vector<1x128xf32>
    %223 = arith.mulf %221, %221 : vector<1x128xf32>
    %224 = arith.subf %222, %223 : vector<1x128xf32>
    %cst_69 = arith.constant 9.99999974E-6 : f32
    %225 = vector.broadcast %cst_69 : f32 to vector<1x128xf32>
    %226 = arith.addf %224, %225 : vector<1x128xf32>
    %227 = math.rsqrt %226 : vector<1x128xf32>
    %228 = arith.mulf %143, %227 : vector<1x128xf32>
    %229 = arith.mulf %221, %228 : vector<1x128xf32>
    %230 = arith.subf %144, %229 : vector<1x128xf32>
    %231 = tpu.concatenate %228, %230 in 0 : vector<1x128xf32>, vector<1x128xf32> -> vector<2x128xf32>
    %cst_70 = arith.constant dense<0.000000e+00> : vector<2x128xf32>
    %232 = tpu.matmul %231, %216, %cst_70 {dimension_numbers = #tpu.dot_dimension_numbers<[1], [0], [0], [1], [0, 0, 1, 1], [], []>} : vector<2x128xf32>, vector<128x128xf32>, vector<2x128xf32> -> vector<2x128xf32>
    %233 = vector.extract_strided_slice %232 {offsets = [0, 0], sizes = [1, 128], strides = [1, 1]} : vector<2x128xf32> to vector<1x128xf32>
    %234 = vector.broadcast %233 : vector<1x128xf32> to vector<40x128xf32>
    %235 = arith.mulf %142, %234 : vector<40x128xf32>
    %236 = vector.extract_strided_slice %232 {offsets = [1, 0], sizes = [1, 128], strides = [1, 1]} : vector<2x128xf32> to vector<1x128xf32>
    %237 = vector.broadcast %236 : vector<1x128xf32> to vector<40x128xf32>
    %238 = arith.addf %235, %237 : vector<40x128xf32>
    %cst_71 = arith.constant 0.000000e+00 : f32
    %239 = vector.broadcast %cst_71 : f32 to vector<40x128xf32>
    %240 = arith.maximumf %238, %239 : vector<40x128xf32>
    %c1_i32_72 = arith.constant 1 : i32
    %241 = tpu.memref_slice %arg8[%c1_i32_72] : memref<2x!tpu.dma_semaphore, #tpu.memory_space<semaphore_mem>> -> memref<1x!tpu.dma_semaphore, #tpu.memory_space<semaphore_mem>>
    %242 = tpu.memref_squeeze %241 : memref<1x!tpu.dma_semaphore, #tpu.memory_space<semaphore_mem>> -> memref<!tpu.dma_semaphore, #tpu.memory_space<semaphore_mem>>
    tpu.wait_dma2 semaphore(%242 : memref<!tpu.dma_semaphore, #tpu.memory_space<semaphore_mem>>) src(%arg4 : memref<640x128xf32, #tpu.memory_space<any>>) dst(%arg7 : memref<640x128xf32, #tpu.memory_space<vmem>>)
    %c0_73 = arith.constant 0 : index
    %c0_74 = arith.constant 0 : index
    %243 = vector.load %arg7[%c0_73, %c0_74] : memref<640x128xf32, #tpu.memory_space<vmem>>, vector<640x128xf32>
    %244 = vector.extract_strided_slice %4 {offsets = [6, 0], sizes = [1, 128], strides = [1, 1]} : vector<8x128xf32> to vector<1x128xf32>
    %245 = vector.shape_cast %240 : vector<40x128xf32> to vector<5x8x128xf32>
    %246 = vector.extract_strided_slice %245 {offsets = [0, 0, 0], sizes = [1, 8, 128], strides = [1, 1, 1]} : vector<5x8x128xf32> to vector<1x8x128xf32>
    %247 = vector.extract_strided_slice %245 {offsets = [1, 0, 0], sizes = [1, 8, 128], strides = [1, 1, 1]} : vector<5x8x128xf32> to vector<1x8x128xf32>
    %248 = vector.extract_strided_slice %245 {offsets = [2, 0, 0], sizes = [1, 8, 128], strides = [1, 1, 1]} : vector<5x8x128xf32> to vector<1x8x128xf32>
    %249 = vector.extract_strided_slice %245 {offsets = [3, 0, 0], sizes = [1, 8, 128], strides = [1, 1, 1]} : vector<5x8x128xf32> to vector<1x8x128xf32>
    %250 = vector.extract_strided_slice %245 {offsets = [4, 0, 0], sizes = [1, 8, 128], strides = [1, 1, 1]} : vector<5x8x128xf32> to vector<1x8x128xf32>
    %251 = tpu.concatenate %246, %247, %248, %249, %250 in 2 : vector<1x8x128xf32>, vector<1x8x128xf32>, vector<1x8x128xf32>, vector<1x8x128xf32>, vector<1x8x128xf32> -> vector<1x8x640xf32>
    %252 = vector.shape_cast %251 : vector<1x8x640xf32> to vector<8x640xf32>
    %cst_75 = arith.constant dense<0.000000e+00> : vector<8x128xf32>
    %253 = tpu.matmul %252, %243, %cst_75 {dimension_numbers = #tpu.dot_dimension_numbers<[1], [0], [0], [1], [0, 0, 1, 1], [], []>} : vector<8x640xf32>, vector<640x128xf32>, vector<8x128xf32> -> vector<8x128xf32>
    %254 = vector.broadcast %244 : vector<1x128xf32> to vector<8x128xf32>
    %255 = arith.addf %253, %254 : vector<8x128xf32>
    %cst_76 = arith.constant 0.000000e+00 : f32
    %256 = vector.broadcast %cst_76 : f32 to vector<8x128xf32>
    %257 = arith.maximumf %255, %256 : vector<8x128xf32>
    %c0_77 = arith.constant 0 : index
    %c0_78 = arith.constant 0 : index
    %258 = vector.load %arg5[%c0_77, %c0_78] : memref<8x128xf32, #tpu.memory_space<vmem>>, vector<8x128xf32>
    tpu.vector_store %arg5[%c0_77, %c0_78], %257 {strides = array<i32>} : memref<8x128xf32, #tpu.memory_space<vmem>>, vector<8x128xf32>,
    return
  }
}

</mosaic_0001>

<bundles_post_ra>
// kernel: cnn_extractor_forward.1
= control target key start
LH: loop header
LB: loop body
LE: loop exit
PB: predicated region body
PF: predicated region fallthrough
CT: control target
= control target key end

     0   :  { %s1711_s17 = smov [#allocation2]   ;;  %s1712_s22 = smov [#allocation3]   ;;  %s2598_s1 = inlined_call_operand.vmem [shape: f32[640,128], index: 1, kind: input, shape index: {}]   ;;  %s2599_s0 = inlined_call_operand.vmem [shape: f32[32,8,128], index: 0, kind: input, shape index: {}]   ;;  %s2600_s2 = inlined_call_operand.vmem [shape: f32[8,128], index: 2, kind: input, shape index: {}]   ;;  %s2601_s3 = inlined_call_operand.hbm [shape: f32[640,128], index: 3, kind: input, shape index: {}]   ;;  %s2602_s4 = inlined_call_operand.hbm [shape: f32[640,128], index: 4, kind: input, shape index: {}]   ;;  %s2603_s5 = inlined_call_operand.vmem [shape: f32[8,128], index: 5, kind: output, shape index: {}]  }
   0x1   :  { %v109_v0 = vld [vmem:[%s2598_s1 + $0x78] sm:$0xff]  ;;  %v108_v2 = vld [vmem:[%s2598_s1 + $0x70] sm:$0xff]  ;;  %v107_v6 = vld [vmem:[%s2598_s1 + $0x68] sm:$0xff]  ;;  %s23_s16 = sshll.u32 %s2601_s3, 4  ;;  %s25_s18 = sshll.u32 %s1711_s17, 4  ;;  %s24_s16 = int_to_ptr.hbm [resolvable:$true] %s23_s16  ;;  %s26_s18 = int_to_ptr.vmem [resolvable:$true] %s25_s18 }
   0x2   :  { %v141_v1 = vld [vmem:[%s2598_s1 + $0x178] sm:$0xff]  ;;  %175 = vmatpush.msra.mxu0 %v109_v0  ;;  %v140_v4 = vld [vmem:[%s2598_s1 + $0x170] sm:$0xff]  ;;  %v139_v8 = vld [vmem:[%s2598_s1 + $0x168] sm:$0xff]  ;;  %28 = dma.hbm_to_vmem [thread:$0]  %s24_s16, 10240, %s26_s18, [#allocation4] }
   0x3   :  { %293 = vmatpush.msra.mxu2 %v141_v1  ;;  %v125_v3 = vld [vmem:[%s2598_s1 + $0xf8] sm:$0xff]  ;;  %v124_v7 = vld [vmem:[%s2598_s1 + $0xf0] sm:$0xff]  ;;  %v123_v10 = vld [vmem:[%s2598_s1 + $0xe8] sm:$0xff]  ;;  %s37_s21 = sshll.u32 %s2602_s4, 4  ;;  %s39_s23 = sshll.u32 %s1712_s22, 4  ;;  %s38_s21 = int_to_ptr.hbm [resolvable:$true] %s37_s21  ;;  %s40_s23 = int_to_ptr.vmem [resolvable:$true] %s39_s23 }
   0x4   :  { %v157_v5 = vld [vmem:[%s2598_s1 + $0x1f8] sm:$0xff]  ;;  %234 = vmatpush.msra.mxu1 %v125_v3  ;;  %176 = vmatpush.msra.mxu0 %v108_v2  ;;  %v156_v9 = vld [vmem:[%s2598_s1 + $0x1f0] sm:$0xff]  ;;  %v106_v11 = vld [vmem:[%s2598_s1 + $0x60] sm:$0xff]  ;;  %42 = dma.hbm_to_vmem [thread:$0]  %s38_s21, 10240, %s40_s23, [#allocation4 + $0x1] }
   0x5   :  { %352 = vmatpush.msra.mxu3 %v157_v5  ;;  %294 = vmatpush.msra.mxu2 %v140_v4  ;;  %v138_v12 = vld [vmem:[%s2598_s1 + $0x160] sm:$0xff]  ;;  %v155_v13 = vld [vmem:[%s2598_s1 + $0x1e8] sm:$0xff]  ;;  %v105_v16 = vld [vmem:[%s2598_s1 + $0x58] sm:$0xff] }
   0x6   :  { %235 = vmatpush.msra.mxu1 %v124_v7  ;;  %177 = vmatpush.msra.mxu0 %v107_v6  ;;  %v122_v14 = vld [vmem:[%s2598_s1 + $0xe0] sm:$0xff]  ;;  %v137_v17 = vld [vmem:[%s2598_s1 + $0x158] sm:$0xff]  ;;  %v104_v20 = vld [vmem:[%s2598_s1 + $0x50] sm:$0xff] }
   0x7   :  { %353 = vmatpush.msra.mxu3 %v156_v9  ;;  %295 = vmatpush.msra.mxu2 %v139_v8  ;;  %v154_v15 = vld [vmem:[%s2598_s1 + $0x1e0] sm:$0xff]  ;;  %v121_v18 = vld [vmem:[%s2598_s1 + $0xd8] sm:$0xff]  ;;  %v136_v21 = vld [vmem:[%s2598_s1 + $0x150] sm:$0xff] }
   0x8   :  { %236 = vmatpush.msra.mxu1 %v123_v10  ;;  %178 = vmatpush.msra.mxu0 %v106_v11  ;;  %v153_v19 = vld [vmem:[%s2598_s1 + $0x1d8] sm:$0xff]  ;;  %v120_v22 = vld [vmem:[%s2598_s1 + $0xd0] sm:$0xff]  ;;  %v103_v24 = vld [vmem:[%s2598_s1 + $0x48] sm:$0xff] }
   0x9   :  { %354 = vmatpush.msra.mxu3 %v155_v13  ;;  %296 = vmatpush.msra.mxu2 %v138_v12  ;;  %v152_v23 = vld [vmem:[%s2598_s1 + $0x1d0] sm:$0xff]  ;;  %v135_v25 = vld [vmem:[%s2598_s1 + $0x148] sm:$0xff]  ;;  %v102_v28 = vld [vmem:[%s2598_s1 + $0x40] sm:$0xff] }
   0xa   :  { %237 = vmatpush.msra.mxu1 %v122_v14  ;;  %179 = vmatpush.msra.mxu0 %v105_v16  ;;  %v119_v26 = vld [vmem:[%s2598_s1 + $0xc8] sm:$0xff]  ;;  %v134_v29 = vld [vmem:[%s2598_s1 + $0x140] sm:$0xff]  ;;  %v101_v32 = vld [vmem:[%s2598_s1 + $0x38] sm:$0xff] }
   0xb   :  { %355 = vmatpush.msra.mxu3 %v154_v15  ;;  %297 = vmatpush.msra.mxu2 %v137_v17  ;;  %v151_v27 = vld [vmem:[%s2598_s1 + $0x1c8] sm:$0xff]  ;;  %v118_v30 = vld [vmem:[%s2598_s1 + $0xc0] sm:$0xff]  ;;  %v133_v33 = vld [vmem:[%s2598_s1 + $0x138] sm:$0xff] }
   0xc   :  { %238 = vmatpush.msra.mxu1 %v121_v18  ;;  %180 = vmatpush.msra.mxu0 %v104_v20  ;;  %v150_v31 = vld [vmem:[%s2598_s1 + $0x1c0] sm:$0xff]  ;;  %v117_v34 = vld [vmem:[%s2598_s1 + $0xb8] sm:$0xff]  ;;  %v100_v36 = vld [vmem:[%s2598_s1 + $0x30] sm:$0xff] }
   0xd   :  { %356 = vmatpush.msra.mxu3 %v153_v19  ;;  %298 = vmatpush.msra.mxu2 %v136_v21  ;;  %v149_v35 = vld [vmem:[%s2598_s1 + $0x1b8] sm:$0xff]  ;;  %v132_v37 = vld [vmem:[%s2598_s1 + $0x130] sm:$0xff]  ;;  %v99_v40 = vld [vmem:[%s2598_s1 + $0x28] sm:$0xff] }
   0xe   :  { %239 = vmatpush.msra.mxu1 %v120_v22  ;;  %181 = vmatpush.msra.mxu0 %v103_v24  ;;  %v116_v38 = vld [vmem:[%s2598_s1 + $0xb0] sm:$0xff]  ;;  %v131_v41 = vld [vmem:[%s2598_s1 + $0x128] sm:$0xff]  ;;  %v98_v44 = vld [vmem:[%s2598_s1 + $0x20] sm:$0xff] }
   0xf   :  { %357 = vmatpush.msra.mxu3 %v152_v23  ;;  %299 = vmatpush.msra.mxu2 %v135_v25  ;;  %v148_v39 = vld [vmem:[%s2598_s1 + $0x1b0] sm:$0xff]  ;;  %v115_v42 = vld [vmem:[%s2598_s1 + $0xa8] sm:$0xff]  ;;  %v130_v45 = vld [vmem:[%s2598_s1 + $0x120] sm:$0xff] }
  0x10   :  { %240 = vmatpush.msra.mxu1 %v119_v26  ;;  %182 = vmatpush.msra.mxu0 %v102_v28  ;;  %v147_v43 = vld [vmem:[%s2598_s1 + $0x1a8] sm:$0xff]  ;;  %v114_v46 = vld [vmem:[%s2598_s1 + $0xa0] sm:$0xff]  ;;  %v97_v48 = vld [vmem:[%s2598_s1 + $0x18] sm:$0xff] }
  0x11   :  { %358 = vmatpush.msra.mxu3 %v151_v27  ;;  %300 = vmatpush.msra.mxu2 %v134_v29  ;;  %v146_v47 = vld [vmem:[%s2598_s1 + $0x1a0] sm:$0xff]  ;;  %v129_v49 = vld [vmem:[%s2598_s1 + $0x118] sm:$0xff]  ;;  %v96_v52 = vld [vmem:[%s2598_s1 + $0x10] sm:$0xff] }
  0x12   :  { %241 = vmatpush.msra.mxu1 %v118_v30  ;;  %183 = vmatpush.msra.mxu0 %v101_v32  ;;  %v113_v50 = vld [vmem:[%s2598_s1 + $0x98] sm:$0xff]  ;;  %v128_v53 = vld [vmem:[%s2598_s1 + $0x110] sm:$0xff]  ;;  %v95_v56 = vld [vmem:[%s2598_s1 + $0x8] sm:$0xff] }
  0x13   :  { %359 = vmatpush.msra.mxu3 %v150_v31  ;;  %301 = vmatpush.msra.mxu2 %v133_v33  ;;  %v145_v51 = vld [vmem:[%s2598_s1 + $0x198] sm:$0xff]  ;;  %v112_v54 = vld [vmem:[%s2598_s1 + $0x90] sm:$0xff]  ;;  %v127_v57 = vld [vmem:[%s2598_s1 + $0x108] sm:$0xff] }
  0x14   :  { %242 = vmatpush.msra.mxu1 %v117_v34  ;;  %184 = vmatpush.msra.mxu0 %v100_v36  ;;  %v144_v55 = vld [vmem:[%s2598_s1 + $0x190] sm:$0xff]  ;;  %v111_v58 = vld [vmem:[%s2598_s1 + $0x88] sm:$0xff]  ;;  %v94_v60 = vld [vmem:[%s2598_s1] sm:$0xff] }
  0x15   :  { %360 = vmatpush.msra.mxu3 %v149_v35  ;;  %302 = vmatpush.msra.mxu2 %v132_v37  ;;  %v143_v59 = vld [vmem:[%s2598_s1 + $0x188] sm:$0xff]  ;;  %v126_v61 = vld [vmem:[%s2598_s1 + $0x100] sm:$0xff]  ;;  %v65_v63 = vld [vmem:[%s2599_s0 + $0x10] sm:$0xff] }
  0x16   :  { %243 = vmatpush.msra.mxu1 %v116_v38  ;;  %185 = vmatpush.msra.mxu0 %v99_v40  ;;  %v63_v62 = vld [vmem:[%s2599_s0] sm:$0xff]  ;;  %v173_v0 = vld [vmem:[%s2598_s1 + $0x278] sm:$0xff]  ;;  %v64_v3 = vld [vmem:[%s2599_s0 + $0x8] sm:$0xff] }
  0x17   :  { %361 = vmatpush.msra.mxu3 %v148_v39  ;;  %303 = vmatpush.msra.mxu2 %v131_v41  ;;  %v110_v1 = vld [vmem:[%s2598_s1 + $0x80] sm:$0xff]  ;;  %v66_v4 = vld [vmem:[%s2599_s0 + $0x18] sm:$0xff]  ;;  %v172_v5 = vld [vmem:[%s2598_s1 + $0x270] sm:$0xff] }
  0x18   :  { %244 = vmatpush.msra.mxu1 %v115_v42  ;;  %186 = vmatpush.msra.mxu0 %v98_v44  ;;  %v142_v2 = vld [vmem:[%s2598_s1 + $0x180] sm:$0xff]  ;;  %v171_v6 = vld [vmem:[%s2598_s1 + $0x268] sm:$0xff]  ;;  %v169_v9 = vld [vmem:[%s2598_s1 + $0x258] sm:$0xff] }
  0x19   :  { %362 = vmatpush.msra.mxu3 %v147_v43  ;;  %304 = vmatpush.msra.mxu2 %v130_v45  ;;  %v170_v7 = vld [vmem:[%s2598_s1 + $0x260] sm:$0xff]  ;;  %v68_v10 = vld [vmem:[%s2599_s0 + $0x28] sm:$0xff]  ;;  %v168_v11 = vld [vmem:[%s2598_s1 + $0x250] sm:$0xff] }
  0x1a   :  { %245 = vmatpush.msra.mxu1 %v114_v46  ;;  %187 = vmatpush.msra.mxu0 %v97_v48  ;;  %v1962_v8 = vld [vmem:[%s2599_s0 + $0x20] sm:$0xff]  ;;  %v167_v12 = vld [vmem:[%s2598_s1 + $0x248] sm:$0xff]  ;;  %v1980_v13 = vld [vmem:[%s2599_s0 + $0x30] sm:$0xff] }
  0x1b   :  { %363 = vmatpush.msra.mxu3 %v146_v47  ;;  %305 = vmatpush.msra.mxu2 %v129_v49  ;;  %v70_v14 = vld [vmem:[%s2599_s0 + $0x38] sm:$0xff]  ;;  %v166_v15 = vld [vmem:[%s2598_s1 + $0x240] sm:$0xff]  ;;  %v72_v17 = vld [vmem:[%s2599_s0 + $0x48] sm:$0xff] }
  0x1c   :  { %246 = vmatpush.msra.mxu1 %v113_v50  ;;  %188 = vmatpush.msra.mxu0 %v96_v52  ;;  %v1993_v16 = vld [vmem:[%s2599_s0 + $0x40] sm:$0xff]  ;;  %v165_v18 = vld [vmem:[%s2598_s1 + $0x238] sm:$0xff]  ;;  %v164_v19 = vld [vmem:[%s2598_s1 + $0x230] sm:$0xff] }
  0x1d   :  { %364 = vmatpush.msra.mxu3 %v145_v51  ;;  %306 = vmatpush.msra.mxu2 %v128_v53  ;;  %v2009_v20 = vld [vmem:[%s2599_s0 + $0x50] sm:$0xff]  ;;  %v74_v21 = vld [vmem:[%s2599_s0 + $0x58] sm:$0xff]  ;;  %v163_v22 = vld [vmem:[%s2598_s1 + $0x228] sm:$0xff] }
  0x1e   :  { %247 = vmatpush.msra.mxu1 %v112_v54  ;;  %189 = vmatpush.msra.mxu0 %v95_v56  ;;  %v2022_v23 = vld [vmem:[%s2599_s0 + $0x60] sm:$0xff]  ;;  %v76_v24 = vld [vmem:[%s2599_s0 + $0x68] sm:$0xff]  ;;  %v2035_v26 = vld [vmem:[%s2599_s0 + $0x70] sm:$0xff] }
  0x1f   :  { %365 = vmatpush.msra.mxu3 %v144_v55  ;;  %307 = vmatpush.msra.mxu2 %v127_v57  ;;  %v162_v25 = vld [vmem:[%s2598_s1 + $0x220] sm:$0xff]  ;;  %v78_v27 = vld [vmem:[%s2599_s0 + $0x78] sm:$0xff]  ;;  %v80_v30 = vld [vmem:[%s2599_s0 + $0x88] sm:$0xff] }
  0x20   :  { %248 = vmatpush.msra.mxu1 %v111_v58  ;;  %190 = vmatpush.msra.mxu0 %v94_v60  ;;  %v161_v28 = vld [vmem:[%s2598_s1 + $0x218] sm:$0xff]  ;;  %v2048_v29 = vld [vmem:[%s2599_s0 + $0x80] sm:$0xff]  ;;  %v160_v31 = vld [vmem:[%s2598_s1 + $0x210] sm:$0xff] }
  0x21   :  { %366 = vmatpush.msra.mxu3 %v143_v59  ;;  %308 = vmatpush.msra.mxu2 %v126_v61  ;;  %v2061_v32 = vld [vmem:[%s2599_s0 + $0x90] sm:$0xff]  ;;  %v82_v33 = vld [vmem:[%s2599_s0 + $0x98] sm:$0xff]  ;;  %v159_v34 = vld [vmem:[%s2598_s1 + $0x208] sm:$0xff] }
  0x22   :  { %191 = vmatmul.f32.vlgmr.msra.gmra.mxu0 %v63_v62  ;;  %309 = vmatmul.f32.vlgmr.msra.gmra.mxu2 %v65_v63  ;;  %v2074_v35 = vld [vmem:[%s2599_s0 + $0xa0] sm:$0xff]  ;;  %v84_v36 = vld [vmem:[%s2599_s0 + $0xa8] sm:$0xff]  ;;  %v2087_v38 = vld [vmem:[%s2599_s0 + $0xb0] sm:$0xff] }
  0x23   :  { %411 = vmatpush.msrb.mxu0 %v173_v0  ;;  %249 = vmatpush.msra.mxu1 %v110_v1  ;;  %v158_v37 = vld [vmem:[%s2598_s1 + $0x200] sm:$0xff]  ;;  %v86_v39 = vld [vmem:[%s2599_s0 + $0xb8] sm:$0xff]  ;;  %v88_v41 = vld [vmem:[%s2599_s0 + $0xc8] sm:$0xff] }
  0x24   :  { %367 = vmatpush.msra.mxu3 %v142_v2  ;;  %250 = vmatmul.f32.vlgmr.msra.gmra.mxu1 %v64_v3  ;;  %v87_v40 = vld [vmem:[%s2599_s0 + $0xc0] sm:$0xff]  ;;  %v89_v42 = vld [vmem:[%s2599_s0 + $0xd0] sm:$0xff]  ;;  %v90_v43 = vld [vmem:[%s2599_s0 + $0xd8] sm:$0xff] }
  0x25   :  { %368 = vmatmul.f32.vlgmr.msra.gmra.mxu3 %v66_v4  ;;  %412 = vmatpush.msrb.mxu0 %v172_v5  ;;  %v91_v44 = vld [vmem:[%s2599_s0 + $0xe0] sm:$0xff]  ;;  %v92_v45 = vld [vmem:[%s2599_s0 + $0xe8] sm:$0xff] }
  0x26   :  { %v2117_v46 = vld [vmem:[%s2600_s2] sm:$0xff] }
  0x27   :  { %413 = vmatpush.msrb.mxu0 %v171_v6  ;;  %v2121_v47 = vperm.slane %v2117_v46, 0 }
  0x29   :  { %414 = vmatpush.msrb.mxu0 %v170_v7 }
  0x2a   :  { %194 = vmatmul.f32.gmra.mxu0 %v65_v63  ;;  %312 = vmatmul.f32.gmra.mxu2 %v1962_v8 }
  0x2b   :  { %415 = vmatpush.msrb.mxu0 %v169_v9 }
  0x2c   :  { %253 = vmatmul.f32.gmra.mxu1 %v66_v4 }
  0x2d   :  { %371 = vmatmul.f32.gmra.mxu3 %v68_v10  ;;  %416 = vmatpush.msrb.mxu0 %v168_v11 }
  0x2f   :  { %417 = vmatpush.msrb.mxu0 %v167_v12 }
  0x31   :  { %418 = vmatpush.msrb.mxu0 %v166_v15 }
  0x32   :  { %197 = vmatmul.f32.gmra.mxu0 %v1962_v8  ;;  %315 = vmatmul.f32.gmra.mxu2 %v1980_v13 }
  0x33   :  { %419 = vmatpush.msrb.mxu0 %v165_v18  ;;  %v44_v18 = vlaneseq }
  0x34   :  { %256 = vmatmul.f32.gmra.mxu1 %v68_v10 }
  0x35   :  { %374 = vmatmul.f32.gmra.mxu3 %v70_v14  ;;  %420 = vmatpush.msrb.mxu0 %v164_v19  ;;  %v2155_v19 = vshrl.u32 %v44_v18, 7 }
  0x37   :  { %421 = vmatpush.msrb.mxu0 %v163_v22 }
  0x39   :  { %422 = vmatpush.msrb.mxu0 %v162_v25  ;;  %v2170_v25 = vadd.s32 96, %v2155_v19 }
  0x3a   :  { %200 = vmatmul.f32.gmra.mxu0 %v1980_v13  ;;  %318 = vmatmul.f32.gmra.mxu2 %v1993_v16 }
  0x3b   :  { %423 = vmatpush.msrb.mxu0 %v161_v28 }
  0x3c   :  { %259 = vmatmul.f32.gmra.mxu1 %v70_v14 }
  0x3d   :  { %377 = vmatmul.f32.gmra.mxu3 %v72_v17  ;;  %424 = vmatpush.msrb.mxu0 %v160_v31 }
  0x3f   :  { %425 = vmatpush.msrb.mxu0 %v159_v34 }
  0x41   :  { %426 = vmatpush.msrb.mxu0 %v158_v37  ;;  %v2192_v37 = vadd.s32 80, %v2155_v19 }
  0x42   :  { %203 = vmatmul.f32.gmra.mxu0 %v1993_v16  ;;  %321 = vmatmul.f32.gmra.mxu2 %v2009_v20 }
  0x44   :  { %262 = vmatmul.f32.gmra.mxu1 %v72_v17  ;;  %v93_v17 = vld [vmem:[%s2599_s0 + $0xf0] sm:$0xff] }
  0x45   :  { %380 = vmatmul.f32.gmra.mxu3 %v74_v21 }
  0x4a   :  { %206 = vmatmul.f32.gmra.mxu0 %v2009_v20  ;;  %324 = vmatmul.f32.gmra.mxu2 %v2022_v23 }
  0x4c   :  { %265 = vmatmul.f32.gmra.mxu1 %v74_v21  ;;  %v2160_v21 = vadd.s32 104, %v2155_v19 }
  0x4d   :  { %383 = vmatmul.f32.gmra.mxu3 %v76_v24 }
  0x52   :  { %209 = vmatmul.f32.gmra.mxu0 %v2022_v23  ;;  %327 = vmatmul.f32.gmra.mxu2 %v2035_v26 }
  0x54   :  { %268 = vmatmul.f32.gmra.mxu1 %v76_v24  ;;  %v1710_v24 = vmov 1.0  }
  0x55   :  { %386 = vmatmul.f32.gmra.mxu3 %v78_v27 }
  0x5a   :  { %212 = vmatmul.f32.gmra.mxu0 %v2035_v26  ;;  %330 = vmatmul.f32.gmra.mxu2 %v2048_v29 }
  0x5c   :  { %271 = vmatmul.f32.gmra.mxu1 %v78_v27  ;;  %v2605_v27 = vand.u32 7, %v2170_v25 }
  0x5d   :  { %389 = vmatmul.f32.gmra.mxu3 %v80_v30 }
  0x62   :  { %215 = vmatmul.f32.gmra.mxu0 %v2048_v29  ;;  %333 = vmatmul.f32.gmra.mxu2 %v2061_v32 }
  0x64   :  { %274 = vmatmul.f32.gmra.mxu1 %v80_v30  ;;  %v2180_v30 = vadd.s32 88, %v2155_v19 }
  0x65   :  { %392 = vmatmul.f32.gmra.mxu3 %v82_v33 }
  0x6a   :  { %218 = vmatmul.f32.gmra.mxu0 %v2061_v32  ;;  %336 = vmatmul.f32.gmra.mxu2 %v2074_v35 }
  0x6c   :  { %277 = vmatmul.f32.gmra.mxu1 %v82_v33  ;;  %v2606_v33 = vand.u32 7, %v2180_v30 }
  0x6d   :  { %395 = vmatmul.f32.gmra.mxu3 %v84_v36 }
  0x72   :  { %221 = vmatmul.f32.gmra.mxu0 %v2074_v35  ;;  %339 = vmatmul.f32.gmra.mxu2 %v2087_v38 }
  0x74   :  { %280 = vmatmul.f32.gmra.mxu1 %v84_v36 }
  0x75   :  { %398 = vmatmul.f32.gmra.mxu3 %v86_v39 }
  0x7a   :  { %224 = vmatmul.f32.gmra.mxu0 %v2087_v38  ;;  %342 = vmatmul.f32.gmra.mxu2 %v87_v40 }
  0x7c   :  { %283 = vmatmul.f32.gmra.mxu1 %v86_v39  ;;  %v2607_v39 = vand.u32 7, %v2192_v37 }
  0x7d   :  { %401 = vmatmul.f32.gmra.mxu3 %v88_v41 }
  0x82   :  { %227 = vmatmul.f32.gmra.mxu0 %v87_v40  ;;  %345 = vmatmul.f32.gmra.mxu2 %v89_v42 }
  0x84   :  { %286 = vmatmul.f32.gmra.mxu1 %v88_v41 }
  0x85   :  { %404 = vmatmul.f32.gmra.mxu3 %v90_v43 }
  0x8a   :  { %230 = vmatmul.f32.gmra.mxu0 %v89_v42  ;;  %348 = vmatmul.f32.gmra.mxu2 %v91_v44 }
  0x8c   :  { %289 = vmatmul.f32.gmra.mxu1 %v90_v43  ;;  %v2204_v43 = vadd.s32 72, %v2155_v19 }
  0x8d   :  { %407 = vmatmul.f32.gmra.mxu3 %v92_v45 }
  0x92   :  { %427 = vmatmul.f32.vlgmr.msrb.gmra.mxu0 %v1962_v8 }
  0x9a   :  { %430 = vmatmul.f32.gmra.mxu0 %v1980_v13 }
  0x9f   :  { %v192_v48 = vpop.f32.mrf.mxu0 }
  0xa0   :  { %v193_v49 = vadd.f32 %v192_v48, %v2121_v47  ;;  %v2608_v48 = vand.u32 7, %v2204_v43 }
  0xa1   :  { %v251_v50 = vpop.f32.mrf.mxu1 }
  0xa2   :  { %433 = vmatmul.f32.gmra.mxu0 %v1993_v16  ;;  %v252_v51 = vadd.f32 %v251_v50, %v193_v49 }
  0xa5   :  { %v310_v52 = vpop.f32.mrf.mxu2 }
  0xa6   :  { %v311_v53 = vadd.f32 %v310_v52, %v252_v51  ;;  %v2214_v51 = vadd.s32 64, %v2155_v19 }
  0xa7   :  { %v195_v54 = vpop.f32.mrf.mxu0 }
  0xa8   :  { %v196_v55 = vadd.f32 %v195_v54, %v2121_v47  ;;  %v369_v56 = vpop.f32.mrf.mxu3  ;;  %v530_v54 = vand.u32 7, %v2214_v51 }
  0xa9   :  { %v370_v57 = vadd.f32 %v369_v56, %v311_v53  ;;  %v254_v58 = vpop.f32.mrf.mxu1 }
  0xaa   :  { %436 = vmatmul.f32.gmra.mxu0 %v2009_v20  ;;  %v255_v59 = vadd.f32 %v254_v58, %v196_v55  ;;  %v2157_v20 = vand.u32 127, %v44_v18  ;;  %v2218_v55 = vadd.s32 56, %v2155_v19 }
  0xac   :  { %vm770_vm1 = vcmp.eq.s32.totalorder %v2605_v27, %v2157_v20  ;;  %vm769_vm2 = vcmp.eq.s32.totalorder %v2606_v33, %v2157_v20  ;;  %vm768_vm3 = vcmp.eq.s32.totalorder %v2607_v39, %v2157_v20  ;;  %vm767_vm4 = vcmp.eq.s32.totalorder %v2608_v48, %v2157_v20 }
  0xad   :  { %v313_v60 = vpop.f32.mrf.mxu2  ;;  %vm766_vm5 = vcmp.eq.s32.totalorder %v530_v54, %v2157_v20 }
  0xae   :  { %v314_v61 = vadd.f32 %v313_v60, %v255_v59  ;;  %v2230_v60 = vadd.s32 48, %v2155_v19 }
  0xaf   :  { %v198_v62 = vpop.f32.mrf.mxu0 }
  0xb0   :  { %v199_v63 = vadd.f32 %v198_v62, %v2121_v47  ;;  %v372_v0 = vpop.f32.mrf.mxu3 }
  0xb1   :  { %v373_v1 = vadd.f32 %v372_v0, %v314_v61  ;;  %v257_v2 = vpop.f32.mrf.mxu1 }
  0xb2   :  { %439 = vmatmul.f32.gmra.mxu0 %v2022_v23  ;;  %v258_v3 = vadd.f32 %v257_v2, %v199_v63  ;;  %v2604_v23 = vand.u32 7, %v2160_v21  ;;  %v516_v63 = vand.u32 7, %v2230_v60 }
  0xb4   :  { %vm771_vm0 = vcmp.eq.s32.totalorder %v2604_v23, %v2157_v20  ;;  %vm764_vm7 = vcmp.eq.s32.totalorder %v516_v63, %v2157_v20 }
  0xb5   :  { %v316_v4 = vpop.f32.mrf.mxu2  ;;  %1628 = vmatpush.msk.msrb.mxu1 %vm771_vm0, %v1710_v24  ;;  %vm644_vm0 = vcmp.lt.s32.totalorder %v516_v63, 2 }
  0xb6   :  { %v317_v5 = vadd.f32 %v316_v4, %v258_v3  ;;  %v2245_v4 = vadd.s32 16, %v2155_v19 }
  0xb7   :  { %v2129_v6 = vpop.f32.mrf.mxu0  ;;  %1629 = vmatpush.msk.msrb.mxu1 %vm770_vm1, %v1710_v24 }
  0xb8   :  { %v375_v7 = vpop.f32.mrf.mxu3  ;;  %v202_v0 = vadd.f32 %v2129_v6, %v2121_v47  ;;  %v488_v27 = vand.u32 7, %v2245_v4 }
  0xb9   :  { %v376_v8 = vadd.f32 %v375_v7, %v317_v5  ;;  %v260_v28 = vpop.f32.mrf.mxu1  ;;  %1630 = vmatpush.msk.msrb.mxu1 %vm769_vm2, %v1710_v24  ;;  %v50_v5 = vadd.s32 40, %v2155_v19 }
  0xba   :  { %442 = vmatmul.f32.gmra.mxu0 %v2035_v26  ;;  %v261_v6 = vadd.f32 %v260_v28, %v202_v0  ;;  %v49_v28 = vadd.s32 32, %v2155_v19  ;;  %vm2279_vm11 = vcmp.lt.s32.totalorder %v488_v27, 2 }
  0xbb   :  { %1631 = vmatpush.msk.msrb.mxu1 %vm768_vm3, %v1710_v24  ;;  %v509_v0 = vand.u32 7, %v50_v5  ;;  %vm646_vm3 = vcmp.lt.s32.totalorder %v530_v54, 2 }
  0xbd   :  { %1632 = vmatpush.msk.msrb.mxu1 %vm767_vm4, %v1710_v24  ;;  %vm763_vm9 = vcmp.eq.s32.totalorder %v509_v0, %v2157_v20  ;;  %vm643_vm14 = vcmp.lt.s32.totalorder %v509_v0, 2  ;;  %vm2354_vm4 = vcmp.eq.s32.totalorder %v488_v27, %v2157_v20 }
  0xbf   :  { %v2132_v9 = vpop.f32.mrf.mxu0  ;;  %1633 = vmatpush.msk.msrb.mxu1 %vm766_vm5, %v1710_v24 }
  0xc0   :  { %v2182_v31 = vpop.f32.mrf.mxu3  ;;  %v205_v2 = vadd.f32 %v2132_v9, %v2121_v47  ;;  %v2254_v9 = vadd.s32 24, %v2155_v19 }
  0xc2   :  { %445 = vmatmul.f32.gmra.mxu0 %v2048_v29  ;;  %v319_v29 = vpop.f32.mrf.mxu2 }
  0xc7   :  { %v2135_v10 = vpop.f32.mrf.mxu0 }
  0xc8   :  { %v2197_v41 = vpop.f32.mrf.mxu3 }
  0xca   :  { %448 = vmatmul.f32.gmra.mxu0 %v2061_v32  ;;  %v322_v36 = vpop.f32.mrf.mxu2 }
  0xcf   :  { %v2138_v11 = vpop.f32.mrf.mxu0 }
  0xd0   :  { %v384_v50 = vpop.f32.mrf.mxu3 }
  0xd2   :  { %451 = vmatmul.f32.gmra.mxu0 %v2074_v35  ;;  %v263_v35 = vpop.f32.mrf.mxu1 }
  0xd7   :  { %v2141_v12 = vpop.f32.mrf.mxu0 }
  0xd8   :  { %v387_v58 = vpop.f32.mrf.mxu3 }
  0xda   :  { %454 = vmatmul.f32.gmra.mxu0 %v2087_v38 }
  0xdf   :  { %v2144_v13 = vpop.f32.mrf.mxu0 }
  0xe0   :  { %v390_v3 = vpop.f32.mrf.mxu3 }
  0xe2   :  { %457 = vmatmul.f32.gmra.mxu0 %v87_v40 }
  0xe7   :  { %v2146_v14 = vpop.f32.mrf.mxu0 }
  0xea   :  { %460 = vmatmul.f32.gmra.mxu0 %v89_v42  ;;  %v266_v42 = vpop.f32.mrf.mxu1 }
  0xef   :  { %v2148_v15 = vpop.f32.mrf.mxu0 }
  0xf2   :  { %463 = vmatmul.f32.gmra.mxu0 %v91_v44  ;;  %v325_v44 = vpop.f32.mrf.mxu2  ;;  %v269_v52 = vpop.f32.mrf.mxu1 }
  0xf7   :  { %v2150_v16 = vpop.f32.mrf.mxu0 }
  0xfa   :  { %466 = vmatmul.f32.gmra.mxu0 %v93_v17  ;;  %v328_v56 = vpop.f32.mrf.mxu2  ;;  %v272_v61 = vpop.f32.mrf.mxu1  ;;  %v211_v17 = vadd.f32 %v2138_v11, %v2121_v47  ;;  %v214_v11 = vadd.f32 %v2141_v12, %v2121_v47 }
  0xfc   :  { %v270_v39 = vadd.f32 %v269_v52, %v211_v17  ;;  %v502_v52 = vand.u32 7, %v49_v28 }
  0xfe   :  { %v329_v12 = vadd.f32 %v328_v56, %v270_v39  ;;  %vm2301_vm13 = vcmp.lt.s32.totalorder %v502_v52, 2  ;;  %vm2313_vm15 = vcmp.eq.s32.totalorder %v502_v52, %v2157_v20 }
  0xff   :  { %v2162_v22 = vpop.f32.mrf.mxu0 }
 0x102   :  { %v331_v62 = vpop.f32.mrf.mxu2  ;;  %v275_v23 = vpop.f32.mrf.mxu1 }
 0x107   :  { %v2172_v26 = vpop.f32.mrf.mxu0 }
 0x10a   :  { %v334_v48 = vpop.f32.mrf.mxu2 }
 0x10f   :  { %v428_v32 = vpop.f32.mrf.mxu0 }
 0x110   :  { %v2185_v34 = vadd.f32 %v428_v32, %v370_v57  ;;  %v523_v57 = vand.u32 7, %v2218_v55  ;;  %v320_v32 = vadd.f32 %v319_v29, %v261_v6 }
 0x112   :  { %vm765_vm6 = vcmp.eq.s32.totalorder %v523_v57, %v2157_v20  ;;  %vm645_vm1 = vcmp.lt.s32.totalorder %v523_v57, 2 }
 0x113   :  { %1634 = vmatpush.msk.msrb.mxu1 %vm765_vm6, %v1710_v24 }
 0x115   :  { %1635 = vmatpush.msk.msrb.mxu1 %vm764_vm7, %v1710_v24 }
 0x117   :  { %v431_v38 = vpop.f32.mrf.mxu0  ;;  %1636 = vmatpush.msk.msrb.mxu1 %vm763_vm9, %v1710_v24 }
 0x118   :  { %v2195_v40 = vadd.f32 %v431_v38, %v373_v1  ;;  %v2236_v1 = vadd.s32 8, %v2155_v19  ;;  %v264_v38 = vadd.f32 %v263_v35, %v205_v2  ;;  %v495_v35 = vand.u32 7, %v2254_v9  ;;  %v393_v9 = vpop.f32.mrf.mxu3 }
 0x119   :  { %v379_v2 = vadd.f32 %v2182_v31, %v320_v32  ;;  %1637 = vmatpush.msk.msrb.mxu1 %vm2313_vm15, %v1710_v24 }
 0x11a   :  { %v481_v18 = vand.u32 7, %v2236_v1  ;;  %v323_v33 = vadd.f32 %v322_v36, %v264_v38  ;;  %vm2292_vm12 = vcmp.lt.s32.totalorder %v495_v35, 2  ;;  %vm2337_vm2 = vcmp.eq.s32.totalorder %v495_v35, %v2157_v20 }
 0x11b   :  { %1638 = vmatpush.msk.msrb.mxu1 %vm2337_vm2, %v1710_v24 }
 0x11c   :  { %vm2263_vm8 = vcmp.lt.s32.totalorder %v481_v18, 2  ;;  %v382_v31 = vadd.f32 %v2197_v41, %v323_v33  ;;  %vm2376_vm7 = vcmp.eq.s32.totalorder %v481_v18, %v2157_v20 }
 0x11d   :  { %1639 = vmatpush.msk.msrb.mxu1 %vm2354_vm4, %v1710_v24 }
 0x11f   :  { %v434_v45 = vpop.f32.mrf.mxu0  ;;  %1640 = vmatpush.msk.msrb.mxu1 %vm2376_vm7, %v1710_v24 }
 0x120   :  { %v2207_v49 = vadd.f32 %v434_v45, %v376_v8  ;;  %v208_v8 = vadd.f32 %v2135_v10, %v2121_v47  ;;  %v2609_v45 = vand.u32 7, %v2155_v19 }
 0x122   :  { %v267_v10 = vadd.f32 %v266_v42, %v208_v8  ;;  %vm2272_vm10 = vcmp.lt.s32.totalorder %v2609_v45, 2  ;;  %v653_v8 = vsel %vm2263_vm8, %v2195_v40, 0.0  ;;  %v654_v33 = vsel %vm2279_vm11, %v2207_v49, 0.0 }
 0x123   :  { %v652_v39 = vsel %vm2272_vm10, %v2185_v34, 0.0 }
 0x124   :  { %v326_v5 = vadd.f32 %v325_v44, %v267_v10  ;;  %v273_v44 = vadd.f32 %v272_v61, %v214_v11  ;;  %v388_v61 = vadd.f32 %v387_v58, %v329_v12  ;;  %v217_v10 = vadd.f32 %v2144_v13, %v2121_v47 }
 0x125   :  { %v685_v11 = vmul.f32 %v652_v39, %v652_v39 }
 0x126   :  { %v385_v32 = vadd.f32 %v384_v50, %v326_v5  ;;  %v332_v38 = vadd.f32 %v331_v62, %v273_v44  ;;  %v666_v5 = vadd.f32 %v653_v8, %v652_v39  ;;  %v276_v39 = vadd.f32 %v275_v23, %v217_v10 }
 0x127   :  { %v437_v53 = vpop.f32.mrf.mxu0  ;;  %v220_v23 = vadd.f32 %v2146_v14, %v2121_v47 }
 0x128   :  { %v2287_v17 = vadd.f32 %v437_v53, %v379_v2  ;;  %v686_v53 = vmul.f32 %v653_v8, %v653_v8  ;;  %v278_v2 = vpop.f32.mrf.mxu1  ;;  %v391_v12 = vadd.f32 %v390_v3, %v332_v38  ;;  %v667_v8 = vadd.f32 %v666_v5, %v654_v33 }
 0x129   :  { %v335_v45 = vadd.f32 %v334_v48, %v276_v39 }
 0x12a   :  { %v655_v50 = vsel %vm2292_vm12, %v2287_v17, 0.0  ;;  %v699_v44 = vadd.f32 %v686_v53, %v685_v11 }
 0x12b   :  { %v688_v0 = vmul.f32 %v655_v50, %v655_v50  ;;  %v394_v48 = vadd.f32 %v393_v9, %v335_v45 }
 0x12f   :  { %v440_v59 = vpop.f32.mrf.mxu0 }
 0x130   :  { %v2299_v41 = vadd.f32 %v440_v59, %v382_v31  ;;  %v687_v59 = vmul.f32 %v654_v33, %v654_v33  ;;  %v396_v33 = vpop.f32.mrf.mxu3  ;;  %v281_v55 = vpop.f32.mrf.mxu1 }
 0x132   :  { %v656_v13 = vsel %vm2301_vm13, %v2299_v41, 0.0  ;;  %v700_v38 = vadd.f32 %v699_v44, %v687_v59 }
 0x134   :  { %v701_v11 = vadd.f32 %v700_v38, %v688_v0 }
 0x137   :  { %v443_v7 = vpop.f32.mrf.mxu0 }
 0x138   :  { %v2310_v62 = vadd.f32 %v443_v7, %v385_v32  ;;  %v337_v7 = vpop.f32.mrf.mxu2 }
 0x13a   :  { %v657_v3 = vsel %vm643_vm14, %v2310_v62, 0.0 }
 0x13b   :  { %v690_v60 = vmul.f32 %v657_v3, %v657_v3 }
 0x13f   :  { %v446_v6 = vpop.f32.mrf.mxu0 }
 0x140   :  { %v2320_v31 = vadd.f32 %v446_v6, %v388_v61  ;;  %v668_v6 = vadd.f32 %v667_v8, %v655_v50  ;;  %v689_v61 = vmul.f32 %v656_v13, %v656_v13  ;;  %v279_v8 = vadd.f32 %v278_v2, %v220_v23  ;;  %v340_v35 = vpop.f32.mrf.mxu2 }
 0x142   :  { %v658_v53 = vsel %vm644_vm0, %v2320_v31, 0.0  ;;  %v669_v5 = vadd.f32 %v668_v6, %v656_v13  ;;  %v702_v10 = vadd.f32 %v701_v11, %v689_v61  ;;  %v223_v61 = vadd.f32 %v2148_v15, %v2121_v47 }
 0x143   :  { %v691_v59 = vmul.f32 %v658_v53, %v658_v53  ;;  %vm806_vm0 = vcmp.lt.s32.totalorder %v2157_v20, 112 }
 0x144   :  { %v703_v57 = vadd.f32 %v702_v10, %v690_v60  ;;  %v284_v60 = vpop.f32.mrf.mxu1 }
 0x147   :  { %v449_v52 = vpop.f32.mrf.mxu0 }
 0x148   :  { %v2328_v32 = vadd.f32 %v449_v52, %v391_v12  ;;  %v670_v12 = vadd.f32 %v669_v5, %v657_v3  ;;  %v704_v52 = vadd.f32 %v703_v57, %v691_v59  ;;  %v338_v3 = vadd.f32 %v337_v7, %v279_v8  ;;  %v343_v27 = vpop.f32.mrf.mxu2 }
 0x149   :  { %v2626_v7 = vand.u32 7, %v2204_v43  ;;  %v282_v5 = vadd.f32 %v281_v55, %v223_v61  ;;  %v2627_v43 = vand.u32 7, %v2192_v37  ;;  %v2630_v37 = vand.u32 7, %v2155_v19 }
 0x14a   :  { %v659_v63 = vsel %vm645_vm1, %v2328_v32, 0.0  ;;  %v671_v13 = vadd.f32 %v670_v12, %v658_v53  ;;  %v399_v53 = vpop.f32.mrf.mxu3  ;;  %v397_v54 = vadd.f32 %v396_v33, %v338_v3  ;;  %v226_v33 = vadd.f32 %v2150_v16, %v2121_v47 }
 0x14b   :  { %v692_v44 = vmul.f32 %v659_v63, %v659_v63  ;;  %vm647_vm5 = vcmp.lt.s32.totalorder %v2626_v7, 2  ;;  %v341_v23 = vadd.f32 %v340_v35, %v282_v5  ;;  %vm648_vm6 = vcmp.lt.s32.totalorder %v2627_v43, 2 }
 0x14c   :  { %v672_v39 = vadd.f32 %v671_v13, %v659_v63  ;;  %v285_v55 = vadd.f32 %v284_v60, %v226_v33  ;;  %v287_v8 = vpop.f32.mrf.mxu1  ;;  %vm2383_vm9 = vcmp.eq.s32.totalorder %v2630_v37, %v2157_v20  ;;  %v229_v3 = vadd.f32 %v2162_v22, %v2121_v47 }
 0x14d   :  { %v705_v9 = vadd.f32 %v704_v52, %v692_v44  ;;  %v400_v59 = vadd.f32 %v399_v53, %v341_v23  ;;  %1641 = vmatpush.msk.msrb.mxu1 %vm2383_vm9, %v1710_v24  ;;  %v232_v7 = vadd.f32 %v2172_v26, %v2121_v47  ;;  %v811_v5 = vand.u32 7, %v2157_v20 }
 0x14e   :  { %v344_v44 = vadd.f32 %v343_v27, %v285_v55  ;;  %v2636_v47 = vand.u32 7, %v2170_v25  ;;  %v2637_v43 = vand.u32 7, %v2160_v21 }
 0x14f   :  { %v452_v14 = vpop.f32.mrf.mxu0  ;;  %vm2405_vm1 = vcmp.eq.s32.totalorder %v811_v5, %v2155_v19 }
 0x150   :  { %v2346_v0 = vadd.f32 %v452_v14, %v394_v48 }
 0x152   :  { %v660_v45 = vsel %vm646_vm3, %v2346_v0, 0.0  ;;  %v402_v48 = vpop.f32.mrf.mxu3  ;;  %vm835_vm3 = vmand %vm806_vm0, %vm2405_vm1 }
 0x153   :  { %v673_v38 = vadd.f32 %v672_v39, %v660_v45  ;;  %v693_v6 = vmul.f32 %v660_v45, %v660_v45  ;;  %v346_v45 = vpop.f32.mrf.mxu2  ;;  %v403_v18 = vadd.f32 %v402_v48, %v344_v44  ;;  %1642 = vmatpush.msk.msrb.mxu2 %vm835_vm3, %v1710_v24 }
 0x154   :  { %v290_v60 = vpop.f32.mrf.mxu1 }
 0x155   :  { %v706_v11 = vadd.f32 %v705_v9, %v693_v6  ;;  %v288_v6 = vadd.f32 %v287_v8, %v229_v3 }
 0x157   :  { %v455_v2 = vpop.f32.mrf.mxu0  ;;  %v347_v22 = vadd.f32 %v346_v45, %v288_v6 }
 0x158   :  { %v2363_v15 = vadd.f32 %v455_v2, %v397_v54 }
 0x15a   :  { %v661_v4 = vsel %vm647_vm5, %v2363_v15, 0.0  ;;  %v405_v53 = vpop.f32.mrf.mxu3  ;;  %vm650_vm5 = vcmp.lt.s32.totalorder %v2636_v47, 2 }
 0x15b   :  { %v674_v63 = vadd.f32 %v673_v38, %v661_v4  ;;  %v694_v10 = vmul.f32 %v661_v4, %v661_v4  ;;  %v2633_v38 = vand.u32 7, %v2180_v30  ;;  %v406_v30 = vadd.f32 %v405_v53, %v347_v22  ;;  %v349_v27 = vpop.f32.mrf.mxu2 }
 0x15d   :  { %v707_v12 = vadd.f32 %v706_v11, %v694_v10  ;;  %vm649_vm14 = vcmp.lt.s32.totalorder %v2633_v38, 2  ;;  %v291_v10 = vadd.f32 %v290_v60, %v232_v7 }
 0x15f   :  { %v458_v57 = vpop.f32.mrf.mxu0  ;;  %v350_v26 = vadd.f32 %v349_v27, %v291_v10 }
 0x160   :  { %v2370_v13 = vadd.f32 %v458_v57, %v400_v59 }
 0x162   :  { %v662_v14 = vsel %vm648_vm6, %v2370_v13, 0.0  ;;  %vm651_vm6 = vcmp.lt.s32.totalorder %v2637_v43, 2 }
 0x163   :  { %v675_v35 = vadd.f32 %v674_v63, %v662_v14  ;;  %v695_v52 = vmul.f32 %v662_v14, %v662_v14 }
 0x165   :  { %v708_v1 = vadd.f32 %v707_v12, %v695_v52  ;;  %v408_v12 = vpop.f32.mrf.mxu3 }
 0x166   :  { %v409_v59 = vadd.f32 %v408_v12, %v350_v26 }
 0x167   :  { %v461_v9 = vpop.f32.mrf.mxu0 }
 0x168   :  { %v2397_v61 = vadd.f32 %v461_v9, %v403_v18 }
 0x16a   :  { %v663_v11 = vsel %vm649_vm14, %v2397_v61, 0.0  ;;  %vm867_vm14 = vcmask 1040384  }
 0x16b   :  { %v676_v54 = vadd.f32 %v675_v35, %v663_v11  ;;  %v696_v2 = vmul.f32 %v663_v11, %v663_v11 }
 0x16d   :  { %v709_v23 = vadd.f32 %v708_v1, %v696_v2 }
 0x16f   :  { %v464_v63 = vpop.f32.mrf.mxu0 }
 0x170   :  { %v2411_v33 = vadd.f32 %v464_v63, %v406_v30 }
 0x172   :  { %v664_v19 = vsel %vm650_vm5, %v2411_v33, 0.0 }
 0x173   :  { %v697_v48 = vmul.f32 %v664_v19, %v664_v19  ;;  %v677_v44 = vadd.f32 %v676_v54, %v664_v19 }
 0x175   :  { %v710_v8 = vadd.f32 %v709_v23, %v697_v48 }
 0x177   :  { %v467_v57 = vpop.f32.mrf.mxu0 }
 0x178   :  { %v468_v55 = vadd.f32 %v467_v57, %v409_v59 }
 0x17a   :  { %v665_v14 = vsel %vm651_vm6, %v468_v55, 0.0 }
 0x17b   :  { %v678_v35 = vadd.f32 %v677_v44, %v665_v14  ;;  %v698_v52 = vmul.f32 %v665_v14, %v665_v14 }
 0x17d   :  { %v679_v37 = vrot.slane %v678_v35, 4  ;;  %v711_v3 = vadd.f32 %v710_v8, %v698_v52 }
 0x17f   :  { %v680_v25 = vadd.f32 %v679_v37, %v678_v35  ;;  %v712_v45 = vrot.slane %v711_v3, 4 }
 0x181   :  { %v681_v1 = vrot.slane %v680_v25, 2  ;;  %v713_v18 = vadd.f32 %v712_v45, %v711_v3 }
 0x183   :  { %v682_v9 = vadd.f32 %v681_v1, %v680_v25  ;;  %v714_v38 = vrot.slane %v713_v18, 2 }
 0x185   :  { %v683_v6 = vrot.slane %v682_v9, 1  ;;  %v715_v53 = vadd.f32 %v714_v38, %v713_v18 }
 0x187   :  { %v716_v22 = vrot.slane %v715_v53, 1  ;;  %v684_v21 = vadd.f32 %v683_v6, %v682_v9 }
 0x189   :  { %v717_v11 = vadd.f32 %v716_v22, %v715_v53 }
 0x18b   :  { %v868_v54 = vsel %vm867_vm14, %v684_v21, %v717_v11 }
 0x18c   :  { %885 = vmatmul.f32.vlgmr.msrb.gmra.mxu1 %v868_v54 }
 0x209   :  { %v886_v2 = vpop.f32.mrf.mxu1 }
 0x20a   :  { %v889_v7 = vmul.f32 0.0025510204, %v886_v2 }
 0x20c   :  { %v890_v5 = vmul.f32 %v889_v7, %v889_v7 }
 0x20e   :  { %v892_v60 = vrot.slane %v890_v5, 7 }
 0x210   :  { %v894_v23 = vsub.f32 %v889_v7, %v892_v60 }
 0x212   :  { %v895_v30 = vadd.f32 1e-05, %v894_v23 }
 0x214   :  { %1654 = vrsqrt.f32 %v895_v30  ;;  %vm902_vm3 = vweird.f32 %v895_v30 }
 0x21a   :  { %v1655_v27 = vpop.eup %1654 }
 0x21b   :  { %v897_v63 = vmul.f32 %v1655_v27, %v895_v30  ;;  %vm903_vm0 = vweird.f32 %v1655_v27 }
 0x21c   :  { %vm904_vm5 = vmor %vm902_vm3, %vm903_vm0 }
 0x21d   :  { %v898_v10 = vmul.f32 %v1655_v27, %v897_v63 }
 0x21f   :  { %v899_v47 = vmul.f32 0.5, %v898_v10 }
 0x221   :  { %v900_v26 = vsub.f32 1.5, %v899_v47 }
 0x223   :  { %v901_v12 = vmul.f32 %v1655_v27, %v900_v26 }
 0x225   :  { %v905_v19 = vsel %vm904_vm5, %v1655_v27, %v901_v12 }
 0x226   :  { %v906_v59 = vmul.f32 %v905_v19, %v2117_v46 }
 0x228   :  { %v908_v48 = vrot.slane %v906_v59, 1 }
 0x22a   :  { %v910_v57 = vmul.f32 %v908_v48, %v889_v7 }
 0x22c   :  { %v912_v43 = vrot.slane %v910_v57, 6 }
 0x22e   :  { %v914_v55 = vsub.f32 %v2117_v46, %v912_v43 }
 0x230   :  { %v916_v44 = vrot.slane %v914_v55, 1 }
 0x232   :  { %v918_v14 = vsel %vm867_vm14, %v908_v48, %v916_v44 }
 0x233   :  { %935 = vmatmul.f32.vlgmr.msrb.gmra.mxu2 %v918_v14 }
 0x2b6   :  { %v936_v8 = vpop.f32.mrf.mxu2 }
 0x2b7   :  { %v939_v35 = vperm.slane %v936_v8, 0  ;;  %v953_v52 = vperm.slane %v936_v8, 1 }
 0x2b9   :  { %v940_v37 = vmul.f32 %v939_v35, %v2185_v34  ;;  %v941_v3 = vmul.f32 %v939_v35, %v2195_v40  ;;  %v942_v25 = vmul.f32 %v939_v35, %v2207_v49  ;;  %v943_v45 = vmul.f32 %v939_v35, %v2287_v17 }
 0x2ba   :  { %v944_v1 = vmul.f32 %v939_v35, %v2299_v41  ;;  %v945_v18 = vmul.f32 %v939_v35, %v2310_v62  ;;  %v946_v9 = vmul.f32 %v939_v35, %v2320_v31  ;;  %v947_v38 = vmul.f32 %v939_v35, %v2328_v32 }
 0x2bb   :  { %v948_v6 = vmul.f32 %v939_v35, %v2346_v0  ;;  %v949_v53 = vmul.f32 %v939_v35, %v2363_v15  ;;  %v950_v34 = vmul.f32 %v939_v35, %v2370_v13  ;;  %v951_v40 = vmul.f32 %v939_v35, %v2397_v61 }
 0x2bc   :  { %v952_v49 = vmul.f32 %v939_v35, %v2411_v33  ;;  %v2442_v22 = vadd.f32 %v953_v52, %v940_v37  ;;  %v2444_v17 = vadd.f32 %v953_v52, %v941_v3  ;;  %v2446_v41 = vadd.f32 %v953_v52, %v942_v25 }
 0x2bd   :  { %v2448_v62 = vadd.f32 %v953_v52, %v943_v45  ;;  %v958_v31 = vadd.f32 %v953_v52, %v944_v1  ;;  %v2450_v32 = vadd.f32 %v953_v52, %v945_v18  ;;  %v960_v0 = vadd.f32 %v953_v52, %v946_v9 }
 0x2be   :  { %v2452_v21 = vadd.f32 %v953_v52, %v947_v38  ;;  %v962_v15 = vadd.f32 %v953_v52, %v948_v6  ;;  %v2454_v13 = vadd.f32 %v953_v52, %v949_v53  ;;  %v2456_v61 = vadd.f32 %v953_v52, %v950_v34 }
 0x2bf   :  { %v2458_v33 = vadd.f32 %v953_v52, %v951_v40  ;;  %v2460_v11 = vadd.f32 %v953_v52, %v952_v49  ;;  %v967_v54 = vmax.f32 %v2442_v22, 0.0  ;;  %v968_v2 = vmax.f32 %v2444_v17, 0.0 }
 0x2c0   :  { %v969_v7 = vmax.f32 %v2446_v41, 0.0  ;;  %v970_v5 = vmax.f32 %v2448_v62, 0.0  ;;  %v2466_v60 = vmax.f32 %v958_v31, 0.0  ;;  %v972_v23 = vmax.f32 %v2450_v32, 0.0 }
 0x2c1   :  { %v2469_v30 = vmax.f32 %v960_v0, 0.0  ;;  %v974_v27 = vmax.f32 %v2452_v21, 0.0  ;;  %v2472_v63 = vmax.f32 %v962_v15, 0.0  ;;  %v976_v10 = vmax.f32 %v2454_v13, 0.0 }
 0x2c2   :  { %v977_v47 = vmax.f32 %v2456_v61, 0.0  ;;  %v978_v26 = vmax.f32 %v2458_v33, 0.0  ;;  %v979_v12 = vmax.f32 %v2460_v11, 0.0 }
 0x2c3   :  { %1706 = dma.done.wait [#allocation4], 10240 }
 0x2c4   :  { %1707 = vsyncadd [#allocation4], 4294957056  ;;  %v998_v19 = vld [vmem:[#allocation2 + $0x78] sm:$0xff]  ;;  %v997_v59 = vld [vmem:[#allocation2 + $0x70] sm:$0xff]  ;;  %v1063_v33 = vperm.slane %v2117_v46, 3 }
 0x2c5   :  { %1064 = vmatpush.msrb.mxu3 %v998_v19  ;;  %v1030_v48 = vld [vmem:[#allocation2 + $0x178] sm:$0xff]  ;;  %v1029_v57 = vld [vmem:[#allocation2 + $0x170] sm:$0xff]  ;;  %v996_v43 = vld [vmem:[#allocation2 + $0x68] sm:$0xff] }
 0x2c6   :  { %1128 = vmatpush.msra.mxu2 %v1030_v48  ;;  %v1014_v55 = vld [vmem:[#allocation2 + $0xf8] sm:$0xff]  ;;  %v1028_v44 = vld [vmem:[#allocation2 + $0x168] sm:$0xff]  ;;  %v1013_v14 = vld [vmem:[#allocation2 + $0xf0] sm:$0xff] }
 0x2c7   :  { %1065 = vmatpush.msrb.mxu3 %v997_v59  ;;  %1096 = vmatpush.msra.mxu1 %v1014_v55  ;;  %v995_v8 = vld [vmem:[#allocation2 + $0x60] sm:$0xff]  ;;  %v1012_v35 = vld [vmem:[#allocation2 + $0xe8] sm:$0xff]  ;;  %v994_v37 = vld [vmem:[#allocation2 + $0x58] sm:$0xff] }
 0x2c8   :  { %1129 = vmatpush.msra.mxu2 %v1029_v57  ;;  %v1027_v52 = vld [vmem:[#allocation2 + $0x160] sm:$0xff]  ;;  %v1026_v25 = vld [vmem:[#allocation2 + $0x158] sm:$0xff]  ;;  %v993_v45 = vld [vmem:[#allocation2 + $0x50] sm:$0xff] }
 0x2c9   :  { %1066 = vmatpush.msrb.mxu3 %v996_v43  ;;  %1097 = vmatpush.msra.mxu1 %v1013_v14  ;;  %v1011_v3 = vld [vmem:[#allocation2 + $0xe0] sm:$0xff]  ;;  %v1010_v1 = vld [vmem:[#allocation2 + $0xd8] sm:$0xff]  ;;  %v1025_v18 = vld [vmem:[#allocation2 + $0x150] sm:$0xff] }
 0x2ca   :  { %1130 = vmatpush.msra.mxu2 %v1028_v44  ;;  %v992_v9 = vld [vmem:[#allocation2 + $0x48] sm:$0xff]  ;;  %v1009_v38 = vld [vmem:[#allocation2 + $0xd0] sm:$0xff]  ;;  %v991_v53 = vld [vmem:[#allocation2 + $0x40] sm:$0xff] }
 0x2cb   :  { %1067 = vmatpush.msrb.mxu3 %v995_v8  ;;  %1098 = vmatpush.msra.mxu1 %v1012_v35  ;;  %v1024_v6 = vld [vmem:[#allocation2 + $0x148] sm:$0xff]  ;;  %v1023_v40 = vld [vmem:[#allocation2 + $0x140] sm:$0xff]  ;;  %v990_v49 = vld [vmem:[#allocation2 + $0x38] sm:$0xff] }
 0x2cc   :  { %1131 = vmatpush.msra.mxu2 %v1027_v52  ;;  %v1008_v34 = vld [vmem:[#allocation2 + $0xc8] sm:$0xff]  ;;  %v1007_v31 = vld [vmem:[#allocation2 + $0xc0] sm:$0xff]  ;;  %v1022_v0 = vld [vmem:[#allocation2 + $0x138] sm:$0xff] }
 0x2cd   :  { %1068 = vmatpush.msrb.mxu3 %v994_v37  ;;  %1099 = vmatpush.msra.mxu1 %v1011_v3  ;;  %v989_v15 = vld [vmem:[#allocation2 + $0x30] sm:$0xff]  ;;  %v1006_v19 = vld [vmem:[#allocation2 + $0xb8] sm:$0xff]  ;;  %v988_v48 = vld [vmem:[#allocation2 + $0x28] sm:$0xff] }
 0x2ce   :  { %1132 = vmatpush.msra.mxu2 %v1026_v25  ;;  %v1021_v59 = vld [vmem:[#allocation2 + $0x130] sm:$0xff]  ;;  %v1020_v43 = vld [vmem:[#allocation2 + $0x128] sm:$0xff]  ;;  %v987_v55 = vld [vmem:[#allocation2 + $0x20] sm:$0xff] }
 0x2cf   :  { %1069 = vmatpush.msrb.mxu3 %v993_v45  ;;  %1100 = vmatpush.msra.mxu1 %v1010_v1  ;;  %v1005_v57 = vld [vmem:[#allocation2 + $0xb0] sm:$0xff]  ;;  %v1004_v44 = vld [vmem:[#allocation2 + $0xa8] sm:$0xff]  ;;  %v1019_v14 = vld [vmem:[#allocation2 + $0x120] sm:$0xff] }
 0x2d0   :  { %1133 = vmatpush.msra.mxu2 %v1025_v18  ;;  %v986_v8 = vld [vmem:[#allocation2 + $0x18] sm:$0xff]  ;;  %v1003_v35 = vld [vmem:[#allocation2 + $0xa0] sm:$0xff]  ;;  %v985_v37 = vld [vmem:[#allocation2 + $0x10] sm:$0xff] }
 0x2d1   :  { %1070 = vmatpush.msrb.mxu3 %v992_v9  ;;  %1101 = vmatpush.msra.mxu1 %v1009_v38  ;;  %v1018_v52 = vld [vmem:[#allocation2 + $0x118] sm:$0xff]  ;;  %v1017_v25 = vld [vmem:[#allocation2 + $0x110] sm:$0xff]  ;;  %v984_v45 = vld [vmem:[#allocation2 + $0x8] sm:$0xff] }
 0x2d2   :  { %1134 = vmatpush.msra.mxu2 %v1024_v6  ;;  %v1002_v3 = vld [vmem:[#allocation2 + $0x98] sm:$0xff]  ;;  %v1001_v1 = vld [vmem:[#allocation2 + $0x90] sm:$0xff]  ;;  %v1016_v18 = vld [vmem:[#allocation2 + $0x108] sm:$0xff] }
 0x2d3   :  { %1071 = vmatpush.msrb.mxu3 %v991_v53  ;;  %1102 = vmatpush.msra.mxu1 %v1008_v34  ;;  %v983_v9 = vld [vmem:[#allocation2] sm:$0xff]  ;;  %v1000_v38 = vld [vmem:[#allocation2 + $0x88] sm:$0xff]  ;;  %v1046_v53 = vld [vmem:[#allocation2 + $0x1f8] sm:$0xff] }
 0x2d4   :  { %1135 = vmatpush.msra.mxu2 %v1023_v40  ;;  %v1015_v6 = vld [vmem:[#allocation2 + $0x100] sm:$0xff]  ;;  %v1045_v40 = vld [vmem:[#allocation2 + $0x1f0] sm:$0xff]  ;;  %v1058_v50 = vld [vmem:[#allocation2 + $0x258] sm:$0xff] }
 0x2d5   :  { %1072 = vmatpush.msrb.mxu3 %v990_v49  ;;  %1103 = vmatpush.msra.mxu1 %v1007_v31  ;;  %v999_v34 = vld [vmem:[#allocation2 + $0x80] sm:$0xff]  ;;  %v1062_v49 = vld [vmem:[#allocation2 + $0x278] sm:$0xff]  ;;  %v1044_v31 = vld [vmem:[#allocation2 + $0x1e8] sm:$0xff] }
 0x2d6   :  { %1136 = vmatpush.msra.mxu2 %v1022_v0  ;;  %v1061_v0 = vld [vmem:[#allocation2 + $0x270] sm:$0xff]  ;;  %v1043_v22 = vld [vmem:[#allocation2 + $0x1e0] sm:$0xff]  ;;  %v1056_v41 = vld [vmem:[#allocation2 + $0x248] sm:$0xff] }
 0x2d7   :  { %1073 = vmatpush.msrb.mxu3 %v989_v15  ;;  %1104 = vmatpush.msra.mxu1 %v1006_v19  ;;  %v1042_v15 = vld [vmem:[#allocation2 + $0x1d8] sm:$0xff]  ;;  %v1059_v58 = vld [vmem:[#allocation2 + $0x260] sm:$0xff]  ;;  %v1041_v17 = vld [vmem:[#allocation2 + $0x1d0] sm:$0xff] }
 0x2d8   :  { %1137 = vmatpush.msra.mxu2 %v1021_v59  ;;  %v1057_v51 = vld [vmem:[#allocation2 + $0x250] sm:$0xff]  ;;  %v1039_v19 = vld [vmem:[#allocation2 + $0x1c0] sm:$0xff] }
 0x2d9   :  { %1074 = vmatpush.msrb.mxu3 %v988_v48  ;;  %1105 = vmatpush.msra.mxu1 %v1005_v57  ;;  %v1055_v59 = vld [vmem:[#allocation2 + $0x240] sm:$0xff]  ;;  %v1037_v16 = vld [vmem:[#allocation2 + $0x1b0] sm:$0xff]  ;;  %v1054_v48 = vld [vmem:[#allocation2 + $0x238] sm:$0xff] }
 0x2da   :  { %1138 = vmatpush.msra.mxu2 %v1020_v43  ;;  %v1036_v57 = vld [vmem:[#allocation2 + $0x1a8] sm:$0xff]  ;;  %v1053_v39 = vld [vmem:[#allocation2 + $0x230] sm:$0xff]  ;;  %v1035_v43 = vld [vmem:[#allocation2 + $0x1a0] sm:$0xff] }
 0x2db   :  { %1075 = vmatpush.msrb.mxu3 %v987_v55  ;;  %1106 = vmatpush.msra.mxu1 %v1004_v44  ;;  %v1052_v55 = vld [vmem:[#allocation2 + $0x228] sm:$0xff]  ;;  %v1034_v44 = vld [vmem:[#allocation2 + $0x198] sm:$0xff] }
 0x2dc   :  { %1139 = vmatpush.msra.mxu2 %v1019_v14  ;;  %v1051_v14 = vld [vmem:[#allocation2 + $0x220] sm:$0xff] }
 0x2dd   :  { %1076 = vmatpush.msrb.mxu3 %v986_v8  ;;  %1107 = vmatpush.msra.mxu1 %v1003_v35  ;;  %v1033_v8 = vld [vmem:[#allocation2 + $0x190] sm:$0xff]  ;;  %v1050_v35 = vld [vmem:[#allocation2 + $0x218] sm:$0xff] }
 0x2de   :  { %1140 = vmatpush.msra.mxu2 %v1018_v52  ;;  %v1032_v52 = vld [vmem:[#allocation2 + $0x188] sm:$0xff] }
 0x2df   :  { %1077 = vmatpush.msrb.mxu3 %v985_v37  ;;  %1108 = vmatpush.msra.mxu1 %v1002_v3  ;;  %v1049_v37 = vld [vmem:[#allocation2 + $0x210] sm:$0xff]  ;;  %v1031_v3 = vld [vmem:[#allocation2 + $0x180] sm:$0xff] }
 0x2e0   :  { %1141 = vmatpush.msra.mxu2 %v1017_v25  ;;  %v1048_v25 = vld [vmem:[#allocation2 + $0x208] sm:$0xff] }
 0x2e1   :  { %1078 = vmatpush.msrb.mxu3 %v984_v45  ;;  %1109 = vmatpush.msra.mxu1 %v1001_v1  ;;  %v1047_v45 = vld [vmem:[#allocation2 + $0x200] sm:$0xff] }
 0x2e2   :  { %1142 = vmatpush.msra.mxu2 %v1016_v18 }
 0x2e3   :  { %1079 = vmatpush.msrb.mxu3 %v983_v9  ;;  %1110 = vmatpush.msra.mxu1 %v1000_v38 }
 0x2e4   :  { %1080 = vmatmul.f32.vlgmr.msrb.gmra.mxu3 %v967_v54  ;;  %1143 = vmatpush.msra.mxu2 %v1015_v6  ;;  %v1060_v54 = vld [vmem:[#allocation2 + $0x268] sm:$0xff] }
 0x2e5   :  { %1160 = vmatpush.msra.mxu3 %v1046_v53  ;;  %1144 = vmatmul.f32.vlgmr.msra.gmra.mxu2 %v969_v7 }
 0x2e6   :  { %1111 = vmatpush.msra.mxu1 %v999_v34  ;;  %1643 = vmatpush.msk.msrb.mxu2 %vm2313_vm15, %v1710_v24 }
 0x2e7   :  { %1161 = vmatpush.msra.mxu3 %v1045_v40  ;;  %1112 = vmatmul.f32.vlgmr.msra.gmra.mxu1 %v968_v2  ;;  %v1040_v2 = vld [vmem:[#allocation2 + $0x1c8] sm:$0xff] }
 0x2e8   :  { %1192 = vmatpush.msrb.mxu1 %v1062_v49  ;;  %1644 = vmatpush.msk.msrb.mxu2 %vm2337_vm2, %v1710_v24 }
 0x2e9   :  { %1162 = vmatpush.msra.mxu3 %v1044_v31 }
 0x2ea   :  { %1193 = vmatpush.msrb.mxu1 %v1061_v0  ;;  %1645 = vmatpush.msk.msrb.mxu2 %vm2354_vm4, %v1710_v24 }
 0x2eb   :  { %1163 = vmatpush.msra.mxu3 %v1043_v22 }
 0x2ec   :  { %1083 = vmatmul.f32.gmra.mxu3 %v969_v7  ;;  %1194 = vmatpush.msrb.mxu1 %v1060_v54  ;;  %v1038_v7 = vld [vmem:[#allocation2 + $0x1b8] sm:$0xff] }
 0x2ed   :  { %1164 = vmatpush.msra.mxu3 %v1042_v15  ;;  %1147 = vmatmul.f32.gmra.mxu2 %v2466_v60 }
 0x2ee   :  { %1195 = vmatpush.msrb.mxu1 %v1059_v58  ;;  %1646 = vmatpush.msk.msrb.mxu2 %vm2376_vm7, %v1710_v24 }
 0x2ef   :  { %1165 = vmatpush.msra.mxu3 %v1041_v17  ;;  %1115 = vmatmul.f32.gmra.mxu1 %v970_v5 }
 0x2f0   :  { %1196 = vmatpush.msrb.mxu1 %v1058_v50  ;;  %1647 = vmatpush.msk.msrb.mxu2 %vm2383_vm9, %v1710_v24 }
 0x2f1   :  { %1166 = vmatpush.msra.mxu3 %v1040_v2 }
 0x2f2   :  { %1197 = vmatpush.msrb.mxu1 %v1057_v51 }
 0x2f3   :  { %1167 = vmatpush.msra.mxu3 %v1039_v19 }
 0x2f4   :  { %1086 = vmatmul.f32.gmra.mxu3 %v2466_v60  ;;  %1198 = vmatpush.msrb.mxu1 %v1056_v41 }
 0x2f5   :  { %1150 = vmatmul.f32.gmra.mxu2 %v2469_v30  ;;  %1168 = vmatpush.msra.mxu3 %v1038_v7 }
 0x2f6   :  { %1199 = vmatpush.msrb.mxu1 %v1055_v59 }
 0x2f7   :  { %1169 = vmatpush.msra.mxu3 %v1037_v16  ;;  %1118 = vmatmul.f32.gmra.mxu1 %v972_v23 }
 0x2f8   :  { %1200 = vmatpush.msrb.mxu1 %v1054_v48 }
 0x2f9   :  { %1170 = vmatpush.msra.mxu3 %v1036_v57 }
 0x2fa   :  { %1201 = vmatpush.msrb.mxu1 %v1053_v39 }
 0x2fb   :  { %1171 = vmatpush.msra.mxu3 %v1035_v43 }
 0x2fc   :  { %1089 = vmatmul.f32.gmra.mxu3 %v2469_v30  ;;  %1202 = vmatpush.msrb.mxu1 %v1052_v55 }
 0x2fd   :  { %1153 = vmatmul.f32.gmra.mxu2 %v2472_v63  ;;  %1172 = vmatpush.msra.mxu3 %v1034_v44 }
 0x2fe   :  { %1203 = vmatpush.msrb.mxu1 %v1051_v14 }
 0x2ff   :  { %1121 = vmatmul.f32.gmra.mxu1 %v974_v27  ;;  %1173 = vmatpush.msra.mxu3 %v1033_v8 }
 0x300   :  { %1204 = vmatpush.msrb.mxu1 %v1050_v35 }
 0x301   :  { %1174 = vmatpush.msra.mxu3 %v1032_v52 }
 0x302   :  { %1205 = vmatpush.msrb.mxu1 %v1049_v37 }
 0x303   :  { %1175 = vmatpush.msra.mxu3 %v1031_v3 }
 0x304   :  { %1092 = vmatmul.f32.gmra.mxu3 %v2472_v63  ;;  %1206 = vmatpush.msrb.mxu1 %v1048_v25 }
 0x305   :  { %1156 = vmatmul.f32.gmra.mxu2 %v977_v47 }
 0x306   :  { %1207 = vmatpush.msrb.mxu1 %v1047_v45 }
 0x307   :  { %1124 = vmatmul.f32.gmra.mxu1 %v976_v10 }
 0x30c   :  { %1176 = vmatmul.f32.vlgmr.msra.gmra.mxu3 %v970_v5 }
 0x30f   :  { %1208 = vmatmul.f32.vlgmr.msrb.gmra.mxu1 %v2466_v60 }
 0x314   :  { %1179 = vmatmul.f32.gmra.mxu3 %v972_v23 }
 0x317   :  { %1211 = vmatmul.f32.gmra.mxu1 %v2469_v30 }
 0x31c   :  { %1182 = vmatmul.f32.gmra.mxu3 %v974_v27 }
 0x31f   :  { %1214 = vmatmul.f32.gmra.mxu1 %v2472_v63 }
 0x324   :  { %1185 = vmatmul.f32.gmra.mxu3 %v976_v10 }
 0x327   :  { %1217 = vmatmul.f32.gmra.mxu1 %v977_v47 }
 0x32c   :  { %1188 = vmatmul.f32.gmra.mxu3 %v978_v26 }
 0x32f   :  { %1220 = vmatmul.f32.gmra.mxu1 %v979_v12 }
 0x364   :  { %v1113_v62 = vpop.f32.mrf.mxu1 }
 0x367   :  { %v1081_v32 = vpop.f32.mrf.mxu3 }
 0x368   :  { %v1145_v63 = vpop.f32.mrf.mxu2  ;;  %v1082_v9 = vadd.f32 %v1081_v32, %v1063_v33 }
 0x36a   :  { %v1114_v34 = vadd.f32 %v1113_v62, %v1082_v9 }
 0x36c   :  { %v1116_v5 = vpop.f32.mrf.mxu1  ;;  %v1146_v54 = vadd.f32 %v1145_v63, %v1114_v34 }
 0x36f   :  { %v1084_v60 = vpop.f32.mrf.mxu3 }
 0x370   :  { %v1148_v61 = vpop.f32.mrf.mxu2  ;;  %v1085_v12 = vadd.f32 %v1084_v60, %v1063_v33 }
 0x372   :  { %v1117_v6 = vadd.f32 %v1116_v5, %v1085_v12 }
 0x374   :  { %v1119_v21 = vpop.f32.mrf.mxu1  ;;  %v1149_v0 = vadd.f32 %v1148_v61, %v1117_v6 }
 0x377   :  { %v1087_v23 = vpop.f32.mrf.mxu3 }
 0x378   :  { %v1151_v26 = vpop.f32.mrf.mxu2  ;;  %v1088_v38 = vadd.f32 %v1087_v23, %v1063_v33 }
 0x37a   :  { %v1120_v40 = vadd.f32 %v1119_v21, %v1088_v38 }
 0x37c   :  { %v1122_v30 = vpop.f32.mrf.mxu1  ;;  %v1152_v15 = vadd.f32 %v1151_v26, %v1120_v40 }
 0x37f   :  { %v1090_v27 = vpop.f32.mrf.mxu3 }
 0x380   :  { %v1091_v49 = vadd.f32 %v1090_v27, %v1063_v33  ;;  %v1154_v22 = vpop.f32.mrf.mxu2 }
 0x382   :  { %v1123_v58 = vadd.f32 %v1122_v30, %v1091_v49 }
 0x384   :  { %v1125_v13 = vpop.f32.mrf.mxu1  ;;  %v1155_v19 = vadd.f32 %v1154_v22, %v1123_v58 }
 0x387   :  { %v1093_v10 = vpop.f32.mrf.mxu3 }
 0x388   :  { %v1094_v41 = vadd.f32 %v1093_v10, %v1063_v33  ;;  %v1157_v44 = vpop.f32.mrf.mxu2 }
 0x38a   :  { %v1126_v39 = vadd.f32 %v1125_v13, %v1094_v41 }
 0x38c   :  { %v1209_v1 = vpop.f32.mrf.mxu1  ;;  %v1158_v52 = vadd.f32 %v1157_v44, %v1126_v39 }
 0x38f   :  { %v1177_v47 = vpop.f32.mrf.mxu3 }
 0x390   :  { %v1178_v50 = vadd.f32 %v1177_v47, %v1146_v54 }
 0x392   :  { %v2537_v16 = vadd.f32 %v1209_v1, %v1178_v50 }
 0x394   :  { %v1212_v18 = vpop.f32.mrf.mxu1  ;;  %v1224_v14 = vsel %vm2272_vm10, %v2537_v16, 0.0 }
 0x395   :  { %v1239_v3 = vmul.f32 %v1224_v14, %v1224_v14 }
 0x397   :  { %v1180_v11 = vpop.f32.mrf.mxu3 }
 0x398   :  { %v1181_v17 = vadd.f32 %v1180_v11, %v1149_v0 }
 0x39a   :  { %v2535_v7 = vadd.f32 %v1212_v18, %v1181_v17 }
 0x39c   :  { %v1215_v53 = vpop.f32.mrf.mxu1  ;;  %v1225_v43 = vsel %vm2263_vm8, %v2535_v7, 0.0  ;;  %vm1302_vm8 = vcmp.lt.s32.totalorder %v2157_v20, 40 }
 0x39d   :  { %v1240_v35 = vmul.f32 %v1225_v43, %v1225_v43  ;;  %v1229_v29 = vadd.f32 %v1225_v43, %v1224_v14  ;;  %vm1303_vm10 = vmand %vm1302_vm8, %vm2405_vm1 }
 0x39e   :  { %1648 = vmatpush.msk.msra.mxu2 %vm1303_vm10, %v1710_v24 }
 0x39f   :  { %v1183_v31 = vpop.f32.mrf.mxu3  ;;  %v1244_v5 = vadd.f32 %v1240_v35, %v1239_v3 }
 0x3a0   :  { %v1184_v2 = vadd.f32 %v1183_v31, %v1152_v15 }
 0x3a2   :  { %v2539_v48 = vadd.f32 %v1215_v53, %v1184_v2 }
 0x3a4   :  { %v1218_v51 = vpop.f32.mrf.mxu1  ;;  %v1226_v8 = vsel %vm2279_vm11, %v2539_v48, 0.0 }
 0x3a5   :  { %v1241_v25 = vmul.f32 %v1226_v8, %v1226_v8  ;;  %v1230_v60 = vadd.f32 %v1229_v29, %v1226_v8 }
 0x3a7   :  { %v1186_v59 = vpop.f32.mrf.mxu3  ;;  %v1245_v23 = vadd.f32 %v1244_v5, %v1241_v25 }
 0x3a8   :  { %v1187_v57 = vadd.f32 %v1186_v59, %v1155_v19 }
 0x3aa   :  { %v2544_v55 = vadd.f32 %v1218_v51, %v1187_v57 }
 0x3ac   :  { %v1227_v37 = vsel %vm2292_vm12, %v2544_v55, 0.0  ;;  %v1221_v62 = vpop.f32.mrf.mxu1 }
 0x3ad   :  { %v1242_v36 = vmul.f32 %v1227_v37, %v1227_v37  ;;  %v1231_v30 = vadd.f32 %v1230_v60, %v1227_v37 }
 0x3af   :  { %v1189_v45 = vpop.f32.mrf.mxu3  ;;  %v1246_v27 = vadd.f32 %v1245_v23, %v1242_v36 }
 0x3b0   :  { %v1190_v32 = vadd.f32 %v1189_v45, %v1158_v52 }
 0x3b2   :  { %v1222_v21 = vadd.f32 %v1221_v62, %v1190_v32 }
 0x3b4   :  { %v1228_v42 = vsel %vm2301_vm13, %v1222_v21, 0.0 }
 0x3b5   :  { %v1232_v63 = vadd.f32 %v1231_v30, %v1228_v42  ;;  %v1243_v13 = vmul.f32 %v1228_v42, %v1228_v42 }
 0x3b7   :  { %v1233_v56 = vrot.slane %v1232_v63, 4  ;;  %v1247_v10 = vadd.f32 %v1246_v27, %v1243_v13 }
 0x3b9   :  { %v1234_v1 = vadd.f32 %v1233_v56, %v1232_v63  ;;  %v1248_v61 = vrot.slane %v1247_v10, 4 }
 0x3bb   :  { %v1235_v47 = vrot.slane %v1234_v1, 2  ;;  %v1249_v18 = vadd.f32 %v1248_v61, %v1247_v10 }
 0x3bd   :  { %v1236_v33 = vadd.f32 %v1235_v47, %v1234_v1  ;;  %v1250_v26 = vrot.slane %v1249_v18, 2 }
 0x3bf   :  { %v1237_v11 = vrot.slane %v1236_v33, 1  ;;  %v1251_v12 = vadd.f32 %v1250_v26, %v1249_v18 }
 0x3c1   :  { %v1252_v9 = vrot.slane %v1251_v12, 1  ;;  %v1238_v38 = vadd.f32 %v1237_v11, %v1236_v33 }
 0x3c3   :  { %v1253_v6 = vadd.f32 %v1252_v9, %v1251_v12 }
 0x3c5   :  { %v1335_v53 = vsel %vm867_vm14, %v1238_v38, %v1253_v6 }
 0x3c6   :  { %1352 = vmatmul.f32.vlgmr.msrb.gmra.mxu2 %v1335_v53 }
 0x449   :  { %v1353_v28 = vpop.f32.mrf.mxu2 }
 0x44a   :  { %v1356_v34 = vmul.f32 0.02, %v1353_v28 }
 0x44c   :  { %v1357_v40 = vmul.f32 %v1356_v34, %v1356_v34 }
 0x44e   :  { %v1359_v49 = vrot.slane %v1357_v40, 7 }
 0x450   :  { %v1361_v31 = vsub.f32 %v1356_v34, %v1359_v49 }
 0x452   :  { %v1362_v0 = vadd.f32 1e-05, %v1361_v31 }
 0x454   :  { %1656 = vrsqrt.f32 %v1362_v0  ;;  %vm1369_vm12 = vweird.f32 %v1362_v0 }
 0x45a   :  { %v1657_v22 = vpop.eup %1656 }
 0x45b   :  { %v1364_v54 = vmul.f32 %v1657_v22, %v1362_v0  ;;  %vm1370_vm11 = vweird.f32 %v1657_v22 }
 0x45c   :  { %vm1371_vm13 = vmor %vm1369_vm12, %vm1370_vm11 }
 0x45d   :  { %v1365_v15 = vmul.f32 %v1657_v22, %v1364_v54 }
 0x45f   :  { %v1366_v58 = vmul.f32 0.5, %v1365_v15 }
 0x461   :  { %v1367_v17 = vsub.f32 1.5, %v1366_v58 }
 0x463   :  { %v1368_v50 = vmul.f32 %v1657_v22, %v1367_v17 }
 0x465   :  { %v1372_v2 = vsel %vm1371_vm13, %v1657_v22, %v1368_v50 }
 0x466   :  { %v1374_v51 = vrot.slane %v1372_v2, 5 }
 0x468   :  { %v1376_v20 = vmul.f32 %v1374_v51, %v2117_v46 }
 0x46a   :  { %v1378_v4 = vrot.slane %v1376_v20, 4 }
 0x46c   :  { %v1380_v19 = vmul.f32 %v1378_v4, %v1356_v34 }
 0x46e   :  { %v1382_v41 = vrot.slane %v1380_v19, 3 }
 0x470   :  { %v1384_v24 = vsub.f32 %v2117_v46, %v1382_v41 }
 0x472   :  { %v1386_v59 = vrot.slane %v1384_v24, 4 }
 0x474   :  { %v1388_v57 = vsel %vm867_vm14, %v1378_v4, %v1386_v59 }
 0x475   :  { %1405 = vmatmul.f32.vlgmr.msra.gmra.mxu2 %v1388_v57 }
 0x4f8   :  { %v1406_v39 = vpop.f32.mrf.mxu2 }
 0x4f9   :  { %v1409_v43 = vperm.slane %v1406_v39, 0  ;;  %v1415_v44 = vperm.slane %v1406_v39, 1 }
 0x4fb   :  { %v1410_v14 = vmul.f32 %v1409_v43, %v2537_v16  ;;  %v1411_v8 = vmul.f32 %v1409_v43, %v2535_v7  ;;  %v1412_v35 = vmul.f32 %v1409_v43, %v2539_v48  ;;  %v1413_v52 = vmul.f32 %v1409_v43, %v2544_v55 }
 0x4fc   :  { %v1414_v37 = vmul.f32 %v1409_v43, %v1222_v21 }
 0x4fd   :  { %v2569_v3 = vadd.f32 %v1415_v44, %v1410_v14  ;;  %v2571_v29 = vadd.f32 %v1415_v44, %v1411_v8  ;;  %v2573_v25 = vadd.f32 %v1415_v44, %v1412_v35  ;;  %v2575_v45 = vadd.f32 %v1415_v44, %v1413_v52 }
 0x4fe   :  { %v2577_v62 = vadd.f32 %v1415_v44, %v1414_v37 }
 0x4ff   :  { %v1421_v32 = vmax.f32 %v2569_v3, 0.0  ;;  %v1422_v16 = vmax.f32 %v2571_v29, 0.0  ;;  %v1423_v7 = vmax.f32 %v2573_v25, 0.0  ;;  %v1424_v48 = vmax.f32 %v2575_v45, 0.0 }
 0x500   :  { %v1425_v55 = vmax.f32 %v2577_v62, 0.0 }
 0x501   :  { %1708 = dma.done.wait [#allocation4 + $0x1], 10240 }
 0x502   :  { %1709 = vsyncadd [#allocation4 + $0x1], 4294957056  ;;  %v1443_v5 = vld [vmem:[#allocation3 + $0x78] sm:$0xff]  ;;  %v1442_v60 = vld [vmem:[#allocation3 + $0x70] sm:$0xff]  ;;  %v1508_v25 = vperm.slane %v2117_v46, 6 }
 0x503   :  { %1509 = vmatpush.msrb.mxu3 %v1443_v5  ;;  %v1441_v36 = vld [vmem:[#allocation3 + $0x68] sm:$0xff]  ;;  %v1440_v21 = vld [vmem:[#allocation3 + $0x60] sm:$0xff]  ;;  %v1491_v23 = vld [vmem:[#allocation3 + $0x1f8] sm:$0xff] }
 0x504   :  { %v1459_v30 = vld [vmem:[#allocation3 + $0xf8] sm:$0xff]  ;;  %1569 = vmatpush.msrb.mxu2 %v1491_v23  ;;  %v1490_v27 = vld [vmem:[#allocation3 + $0x1f0] sm:$0xff]  ;;  %v1489_v56 = vld [vmem:[#allocation3 + $0x1e8] sm:$0xff] }
 0x505   :  { %1510 = vmatpush.msrb.mxu3 %v1442_v60  ;;  %v1439_v42 = vld [vmem:[#allocation3 + $0x58] sm:$0xff]  ;;  %1529 = vmatpush.msra.mxu0 %v1459_v30  ;;  %v1458_v63 = vld [vmem:[#allocation3 + $0xf0] sm:$0xff]  ;;  %v1457_v1 = vld [vmem:[#allocation3 + $0xe8] sm:$0xff] }
 0x506   :  { %v1475_v13 = vld [vmem:[#allocation3 + $0x178] sm:$0xff]  ;;  %v1438_v10 = vld [vmem:[#allocation3 + $0x50] sm:$0xff]  ;;  %1570 = vmatpush.msrb.mxu2 %v1490_v27  ;;  %v1488_v47 = vld [vmem:[#allocation3 + $0x1e0] sm:$0xff] }
 0x507   :  { %1511 = vmatpush.msrb.mxu3 %v1441_v36  ;;  %1530 = vmatpush.msra.mxu0 %v1458_v63  ;;  %v1474_v61 = vld [vmem:[#allocation3 + $0x170] sm:$0xff]  ;;  %v1456_v18 = vld [vmem:[#allocation3 + $0xe0] sm:$0xff]  ;;  %v1437_v33 = vld [vmem:[#allocation3 + $0x48] sm:$0xff] }
 0x508   :  { %1549 = vmatpush.msra.mxu1 %v1475_v13  ;;  %1571 = vmatpush.msrb.mxu2 %v1489_v56  ;;  %v1473_v26 = vld [vmem:[#allocation3 + $0x168] sm:$0xff]  ;;  %v1487_v11 = vld [vmem:[#allocation3 + $0x1d8] sm:$0xff]  ;;  %v1436_v9 = vld [vmem:[#allocation3 + $0x40] sm:$0xff] }
 0x509   :  { %1512 = vmatpush.msrb.mxu3 %v1440_v21  ;;  %1531 = vmatpush.msra.mxu0 %v1457_v1  ;;  %v1455_v12 = vld [vmem:[#allocation3 + $0xd8] sm:$0xff]  ;;  %v1472_v38 = vld [vmem:[#allocation3 + $0x160] sm:$0xff]  ;;  %v1486_v6 = vld [vmem:[#allocation3 + $0x1d0] sm:$0xff] }
 0x50a   :  { %1550 = vmatpush.msra.mxu1 %v1474_v61  ;;  %1572 = vmatpush.msrb.mxu2 %v1488_v47  ;;  %v1454_v53 = vld [vmem:[#allocation3 + $0xd0] sm:$0xff]  ;;  %v1435_v28 = vld [vmem:[#allocation3 + $0x38] sm:$0xff]  ;;  %v1485_v40 = vld [vmem:[#allocation3 + $0x1c8] sm:$0xff] }
 0x50b   :  { %1513 = vmatpush.msrb.mxu3 %v1439_v42  ;;  %1532 = vmatpush.msra.mxu0 %v1456_v18  ;;  %v1471_v34 = vld [vmem:[#allocation3 + $0x158] sm:$0xff]  ;;  %v1453_v49 = vld [vmem:[#allocation3 + $0xc8] sm:$0xff]  ;;  %v1434_v31 = vld [vmem:[#allocation3 + $0x30] sm:$0xff] }
 0x50c   :  { %1551 = vmatpush.msra.mxu1 %v1473_v26  ;;  %1573 = vmatpush.msrb.mxu2 %v1487_v11  ;;  %v1470_v0 = vld [vmem:[#allocation3 + $0x150] sm:$0xff]  ;;  %v1484_v22 = vld [vmem:[#allocation3 + $0x1c0] sm:$0xff]  ;;  %v1433_v15 = vld [vmem:[#allocation3 + $0x28] sm:$0xff] }
 0x50d   :  { %1514 = vmatpush.msrb.mxu3 %v1438_v10  ;;  %1533 = vmatpush.msra.mxu0 %v1455_v12  ;;  %v1452_v54 = vld [vmem:[#allocation3 + $0xc0] sm:$0xff]  ;;  %v1469_v58 = vld [vmem:[#allocation3 + $0x148] sm:$0xff]  ;;  %v1483_v17 = vld [vmem:[#allocation3 + $0x1b8] sm:$0xff] }
 0x50e   :  { %1552 = vmatpush.msra.mxu1 %v1472_v38  ;;  %1574 = vmatpush.msrb.mxu2 %v1486_v6  ;;  %v1451_v50 = vld [vmem:[#allocation3 + $0xb8] sm:$0xff]  ;;  %v1432_v2 = vld [vmem:[#allocation3 + $0x20] sm:$0xff]  ;;  %v1482_v20 = vld [vmem:[#allocation3 + $0x1b0] sm:$0xff] }
 0x50f   :  { %1515 = vmatpush.msrb.mxu3 %v1437_v33  ;;  %1534 = vmatpush.msra.mxu0 %v1454_v53  ;;  %v1468_v51 = vld [vmem:[#allocation3 + $0x140] sm:$0xff]  ;;  %v1450_v4 = vld [vmem:[#allocation3 + $0xb0] sm:$0xff]  ;;  %v1431_v19 = vld [vmem:[#allocation3 + $0x18] sm:$0xff] }
 0x510   :  { %1553 = vmatpush.msra.mxu1 %v1471_v34  ;;  %1575 = vmatpush.msrb.mxu2 %v1485_v40  ;;  %v1467_v41 = vld [vmem:[#allocation3 + $0x138] sm:$0xff]  ;;  %v1481_v24 = vld [vmem:[#allocation3 + $0x1a8] sm:$0xff]  ;;  %v1430_v57 = vld [vmem:[#allocation3 + $0x10] sm:$0xff] }
 0x511   :  { %1516 = vmatpush.msrb.mxu3 %v1436_v9  ;;  %1535 = vmatpush.msra.mxu0 %v1453_v49  ;;  %v1449_v59 = vld [vmem:[#allocation3 + $0xa8] sm:$0xff]  ;;  %v1466_v39 = vld [vmem:[#allocation3 + $0x130] sm:$0xff]  ;;  %v1480_v43 = vld [vmem:[#allocation3 + $0x1a0] sm:$0xff] }
 0x512   :  { %1554 = vmatpush.msra.mxu1 %v1470_v0  ;;  %1576 = vmatpush.msrb.mxu2 %v1484_v22  ;;  %v1448_v44 = vld [vmem:[#allocation3 + $0xa0] sm:$0xff]  ;;  %v1429_v14 = vld [vmem:[#allocation3 + $0x8] sm:$0xff]  ;;  %v1479_v35 = vld [vmem:[#allocation3 + $0x198] sm:$0xff] }
 0x513   :  { %1517 = vmatpush.msrb.mxu3 %v1435_v28  ;;  %1536 = vmatpush.msra.mxu0 %v1452_v54  ;;  %v1465_v8 = vld [vmem:[#allocation3 + $0x128] sm:$0xff]  ;;  %v1447_v52 = vld [vmem:[#allocation3 + $0x98] sm:$0xff]  ;;  %v1428_v37 = vld [vmem:[#allocation3] sm:$0xff] }
 0x514   :  { %1555 = vmatpush.msra.mxu1 %v1469_v58  ;;  %1577 = vmatpush.msrb.mxu2 %v1483_v17  ;;  %v1464_v5 = vld [vmem:[#allocation3 + $0x120] sm:$0xff]  ;;  %v1507_v60 = vld [vmem:[#allocation3 + $0x278] sm:$0xff]  ;;  %v1478_v36 = vld [vmem:[#allocation3 + $0x190] sm:$0xff] }
 0x515   :  { %1518 = vmatpush.msrb.mxu3 %v1434_v31  ;;  %1537 = vmatpush.msra.mxu0 %v1451_v50  ;;  %v1446_v21 = vld [vmem:[#allocation3 + $0x90] sm:$0xff]  ;;  %v1463_v30 = vld [vmem:[#allocation3 + $0x118] sm:$0xff]  ;;  %v1477_v42 = vld [vmem:[#allocation3 + $0x188] sm:$0xff] }
 0x516   :  { %1556 = vmatpush.msra.mxu1 %v1468_v51  ;;  %1578 = vmatpush.msrb.mxu2 %v1482_v20  ;;  %v1506_v23 = vld [vmem:[#allocation3 + $0x270] sm:$0xff]  ;;  %v1445_v27 = vld [vmem:[#allocation3 + $0x88] sm:$0xff]  ;;  %v1476_v56 = vld [vmem:[#allocation3 + $0x180] sm:$0xff] }
 0x517   :  { %1519 = vmatpush.msrb.mxu3 %v1433_v15  ;;  %1538 = vmatpush.msra.mxu0 %v1450_v4  ;;  %v1505_v63 = vld [vmem:[#allocation3 + $0x268] sm:$0xff]  ;;  %v1462_v13 = vld [vmem:[#allocation3 + $0x110] sm:$0xff]  ;;  %v1444_v10 = vld [vmem:[#allocation3 + $0x80] sm:$0xff] }
 0x518   :  { %1557 = vmatpush.msra.mxu1 %v1467_v41  ;;  %1579 = vmatpush.msrb.mxu2 %v1481_v24  ;;  %v1504_v1 = vld [vmem:[#allocation3 + $0x260] sm:$0xff]  ;;  %v1461_v61 = vld [vmem:[#allocation3 + $0x108] sm:$0xff]  ;;  %v1503_v47 = vld [vmem:[#allocation3 + $0x258] sm:$0xff] }
 0x519   :  { %1520 = vmatpush.msrb.mxu3 %v1432_v2  ;;  %1539 = vmatpush.msra.mxu0 %v1449_v59  ;;  %v1460_v3 = vld [vmem:[#allocation3 + $0x100] sm:$0xff]  ;;  %v1501_v18 = vld [vmem:[#allocation3 + $0x248] sm:$0xff]  ;;  %v1499_v26 = vld [vmem:[#allocation3 + $0x238] sm:$0xff] }
 0x51a   :  { %1558 = vmatpush.msra.mxu1 %v1466_v39  ;;  %1580 = vmatpush.msrb.mxu2 %v1480_v43  ;;  %v1500_v33 = vld [vmem:[#allocation3 + $0x240] sm:$0xff]  ;;  %v1498_v11 = vld [vmem:[#allocation3 + $0x230] sm:$0xff]  ;;  %v1497_v45 = vld [vmem:[#allocation3 + $0x228] sm:$0xff] }
 0x51b   :  { %1521 = vmatpush.msrb.mxu3 %v1431_v19  ;;  %1540 = vmatpush.msra.mxu0 %v1448_v44  ;;  %v1495_v12 = vld [vmem:[#allocation3 + $0x218] sm:$0xff]  ;;  %v1494_v29 = vld [vmem:[#allocation3 + $0x210] sm:$0xff]  ;;  %v1492_v9 = vld [vmem:[#allocation3 + $0x200] sm:$0xff] }
 0x51c   :  { %1559 = vmatpush.msra.mxu1 %v1465_v8  ;;  %1581 = vmatpush.msrb.mxu2 %v1479_v35 }
 0x51d   :  { %1522 = vmatpush.msrb.mxu3 %v1430_v57  ;;  %1541 = vmatpush.msra.mxu0 %v1447_v52 }
 0x51e   :  { %1560 = vmatpush.msra.mxu1 %v1464_v5  ;;  %1582 = vmatpush.msrb.mxu2 %v1478_v36 }
 0x51f   :  { %1523 = vmatpush.msrb.mxu3 %v1429_v14  ;;  %1542 = vmatpush.msra.mxu0 %v1446_v21 }
 0x520   :  { %1561 = vmatpush.msra.mxu1 %v1463_v30  ;;  %1583 = vmatpush.msrb.mxu2 %v1477_v42 }
 0x521   :  { %1524 = vmatpush.msrb.mxu3 %v1428_v37  ;;  %1543 = vmatpush.msra.mxu0 %v1445_v27 }
 0x522   :  { %1525 = vmatmul.f32.vlgmr.msrb.gmra.mxu3 %v1421_v32  ;;  %1562 = vmatpush.msra.mxu1 %v1462_v13  ;;  %v1502_v32 = vld [vmem:[#allocation3 + $0x250] sm:$0xff] }
 0x523   :  { %1589 = vmatpush.msra.mxu3 %v1507_v60  ;;  %1584 = vmatpush.msrb.mxu2 %v1476_v56 }
 0x524   :  { %1544 = vmatpush.msra.mxu0 %v1444_v10  ;;  %1585 = vmatmul.f32.vlgmr.msrb.gmra.mxu2 %v1424_v48  ;;  %v1496_v48 = vld [vmem:[#allocation3 + $0x220] sm:$0xff] }
 0x525   :  { %1590 = vmatpush.msra.mxu3 %v1506_v23  ;;  %1563 = vmatpush.msra.mxu1 %v1461_v61 }
 0x526   :  { %1545 = vmatmul.f32.vlgmr.msra.gmra.mxu0 %v1422_v16  ;;  %v1493_v16 = vld [vmem:[#allocation3 + $0x208] sm:$0xff] }
 0x527   :  { %1591 = vmatpush.msra.mxu3 %v1505_v63  ;;  %1564 = vmatpush.msra.mxu1 %v1460_v3 }
 0x528   :  { %1565 = vmatmul.f32.vlgmr.msra.gmra.mxu1 %v1423_v7 }
 0x529   :  { %1592 = vmatpush.msra.mxu3 %v1504_v1 }
 0x52b   :  { %1593 = vmatpush.msra.mxu3 %v1503_v47 }
 0x52d   :  { %1594 = vmatpush.msra.mxu3 %v1502_v32 }
 0x52f   :  { %1595 = vmatpush.msra.mxu3 %v1501_v18 }
 0x531   :  { %1596 = vmatpush.msra.mxu3 %v1500_v33 }
 0x533   :  { %1597 = vmatpush.msra.mxu3 %v1499_v26 }
 0x535   :  { %1598 = vmatpush.msra.mxu3 %v1498_v11 }
 0x537   :  { %1599 = vmatpush.msra.mxu3 %v1497_v45 }
 0x539   :  { %1600 = vmatpush.msra.mxu3 %v1496_v48 }
 0x53b   :  { %1601 = vmatpush.msra.mxu3 %v1495_v12 }
 0x53d   :  { %1602 = vmatpush.msra.mxu3 %v1494_v29 }
 0x53f   :  { %1603 = vmatpush.msra.mxu3 %v1493_v16 }
 0x541   :  { %1604 = vmatpush.msra.mxu3 %v1492_v9 }
 0x542   :  { %1605 = vmatmul.f32.vlgmr.msra.gmra.mxu3 %v1425_v55 }
 0x5a3   :  { %v1546_v6 = vpop.f32.mrf.mxu0 }
 0x5a5   :  { %v1526_v7 = vpop.f32.mrf.mxu3  ;;  %v1566_v28 = vpop.f32.mrf.mxu1 }
 0x5a6   :  { %v1527_v38 = vadd.f32 %v1526_v7, %v1508_v25 }
 0x5a7   :  { %v1586_v40 = vpop.f32.mrf.mxu2 }
 0x5a8   :  { %v1547_v53 = vadd.f32 %v1546_v6, %v1527_v38 }
 0x5aa   :  { %v1567_v34 = vadd.f32 %v1566_v28, %v1547_v53 }
 0x5ac   :  { %v1587_v49 = vadd.f32 %v1586_v40, %v1567_v34 }
 0x5c5   :  { %v1606_v31 = vpop.f32.mrf.mxu3 }
 0x5c6   :  { %v1607_v0 = vadd.f32 %v1606_v31, %v1587_v49 }
 0x5c8   :  { %v1609_v22 = vmax.f32 %v1607_v0, 0.0 }
 0x5ca   :  { %1610 = vst [vmem:[%s2603_s5] sm:$0xff] %v1609_v22 }
 0x5cb   :  { %1615 = vsyncmov [#allocation4] }
 0x5ce   :  { %s1616_s24 = vpop.sfrf %1615 }
 0x5cf   :  { %p1649_p0 = scmp.ne.s32.totalorder %s1616_s24, 0 }
 0x5d1   :  { %1620 = shalt.err (%p1649_p0)  }
 0x5d2   :  { %1622 = vsyncmov [#allocation4 + $0x1] }
 0x5d5   :  { %s1623_s25 = vpop.sfrf %1622 }
 0x5d6   :  { %p1650_p1 = scmp.ne.s32.totalorder %s1623_s25, 0 }
 0x5d8   :  { %1627 = shalt.err (%p1650_p1)  }

</bundles_post_ra>
